<compile_context>
chip_gen: v7x
topology: tpu7x:2x2x1
jax: 0.10.0
libtpu: 0.0.40
codegen_flags: <defaults>
</compile_context>

<pallas_src>
import numpy as np
import jax
import jax.numpy as jnp
from jax.experimental import pallas as pl
from jax.experimental.pallas import tpu as pltpu

# --------------------------------------------------------------------------
# Synthetic sphere template (octahedron) replacing the repo's pickled sphere.
# --------------------------------------------------------------------------
_VERTS = np.array([[1, 0, 0], [-1, 0, 0], [0, 1, 0],
                   [0, -1, 0], [0, 0, 1], [0, 0, -1]], np.float32)
NUM_POINTS = _VERTS.shape[0]                                  # number_pnts_on_template
SPHERE_POINTS_NORMALS = np.concatenate([_VERTS, _VERTS], 1)   # (P, 6), cols 0:3 = xyz
SPHERE_EDGES = np.array([[1, 3], [3, 2], [2, 4], [4, 1],
                         [1, 5], [2, 5], [3, 5], [4, 5],
                         [1, 6], [2, 6], [3, 6], [4, 6]], np.int32)   # 1-indexed
SPHERE_FACES = np.array([[1, 3, 5], [3, 2, 5], [2, 4, 5], [4, 1, 5],
                         [3, 1, 6], [2, 3, 6], [4, 2, 6], [1, 4, 6]], np.int32)
N_EDGES = SPHERE_EDGES.shape[0]
N_FACES = SPHERE_FACES.shape[0]

SPHERE_ADJACENCY = np.zeros((NUM_POINTS, NUM_POINTS), np.float32)
for a, b in SPHERE_EDGES:
    SPHERE_ADJACENCY[a - 1, b - 1] = 1.0
    SPHERE_ADJACENCY[b - 1, a - 1] = 1.0

SPHERE_EDGE2FACE = np.zeros((N_EDGES, N_FACES), np.float32)
for e, (a, b) in enumerate(SPHERE_EDGES):
    for f, face in enumerate(SPHERE_FACES):
        if a in face and b in face:
            SPHERE_EDGE2FACE[e, f] = 1.0

EDGE_INCIDENCE = np.zeros((N_EDGES, NUM_POINTS), np.float32)
for e, (a, b) in enumerate(SPHERE_EDGES):
    EDGE_INCIDENCE[e, a - 1] += 1.0
    EDGE_INCIDENCE[e, b - 1] += 1.0

# --------------------------------------------------------------------------
# Config (small, deterministic) — mirrors DensTMNet.__init__ choices.
# --------------------------------------------------------------------------
SUBNETWORKS = 2          # cfg['data']['tmn_subnetworks']
TRAIN_E_E = True         # cfg['data']['with_edge_classifier']
FACE_SAMPLES = 2         # cfg['data']['face_samples']
N_CLASSES = 9            # pix3d_n_classes
FEAT_DIM = 52            # encoder feature dim (1024 in the real model)
ENC_HIDDEN = 128
ENC_OUT_PAD = 128        # lane-dense encoder output (sliced to FEAT_DIM)
CODE_DIM = FEAT_DIM + N_CLASSES          # 61
BOTTLENECK = 3 + CODE_DIM                # 64, PointGenCon / EREstimate bottleneck
LANE_TILE = 128                          # one batch element per lane tile
EQ = N_EDGES * FACE_SAMPLES              # 24 sampled points per batch

assert NUM_POINTS <= LANE_TILE and EQ <= LANE_TILE


def _round_up(x, m):
    return ((x + m - 1) // m) * m


def _pick_vmem_limit():
    # Generation-aware VMEM budget (v7x: 64 MiB physical; v5e/v6e: 128 MiB).
    try:
        info = pltpu.get_tpu_info()
        for name in ("vmem_capacity_bytes", "vmem_size_bytes", "vmem_bytes"):
            cap = getattr(info, name, None)
            if cap:
                return int(min(max(int(cap) // 2, 16 << 20), 96 << 20))
    except Exception:
        pass
    return 32 << 20


VMEM_LIMIT = _pick_vmem_limit()


# --------------------------------------------------------------------------
# Pallas kernels
# --------------------------------------------------------------------------
def _encoder_kernel(x_ref, w1_ref, b1_ref, w2_ref, b2_ref, o_ref):
    # TODO(synk): resnet18_full backbone not reproduced layer-by-layer; a
    # 2-layer MLP on the flattened NCHW image stands in for the image encoder.
    h = jnp.dot(x_ref[...], w1_ref[...], preferred_element_type=jnp.float32)
    h = jnp.maximum(h + b1_ref[...], 0.0)
    o_ref[...] = (jnp.dot(h.astype(jnp.bfloat16), w2_ref[...],
                          preferred_element_type=jnp.float32) + b2_ref[...])


def encoder_forward(image, p):
    """2-layer MLP encoder on the flattened image. Returns (B, FEAT_DIM) f32."""
    B = image.shape[0]
    x = image.reshape(B, -1).astype(jnp.bfloat16)    # bf16 stream: half the DMA bytes
    D = x.shape[1]
    BP = _round_up(max(B, 8), 8)                     # sublane-full M
    x = jnp.pad(x, ((0, BP - B), (0, 0)))
    out = pl.pallas_call(
        _encoder_kernel,
        out_shape=jax.ShapeDtypeStruct((BP, ENC_OUT_PAD), jnp.float32),
        grid=(1,),
        in_specs=[pl.BlockSpec((BP, D), lambda i: (0, 0)),
                  pl.BlockSpec((D, ENC_HIDDEN), lambda i: (0, 0)),
                  pl.BlockSpec((1, ENC_HIDDEN), lambda i: (0, 0)),
                  pl.BlockSpec((ENC_HIDDEN, ENC_OUT_PAD), lambda i: (0, 0)),
                  pl.BlockSpec((1, ENC_OUT_PAD), lambda i: (0, 0))],
        out_specs=pl.BlockSpec((BP, ENC_OUT_PAD), lambda i: (0, 0)),
        compiler_params=pltpu.CompilerParams(
            dimension_semantics=("arbitrary",),
            vmem_limit_bytes=VMEM_LIMIT),
    )(x, p["w1"], p["b1"], p["w2"], p["b2"])
    return out[:B, :FEAT_DIM]


def _conv_stack(x_f32, feat_col, w1g, w2, b2, w3, b3, w4, b4, *, final_tanh):
    """PointGenCon / EREstimate body on one (3, LANE_TILE) tile.

    1x1 Conv1d == channel matmul; BN(eval) + bias folded into w/b. Layer-1
    xyz path (K=3) is 3 VPU multiply-adds; the point-invariant feature column
    `feat_col` (C1, 1) was hoisted to the wrapper and is broadcast-added.
    """
    bf16 = jnp.bfloat16
    h = (w1g[:, 0:1] * x_f32[0:1, :]
         + w1g[:, 1:2] * x_f32[1:2, :]
         + w1g[:, 2:3] * x_f32[2:3, :])                      # (C1, LT) on the VPU
    h = jnp.maximum(h + feat_col, 0.0)
    h = jnp.maximum(jnp.dot(w2, h.astype(bf16),
                            preferred_element_type=jnp.float32) + b2, 0.0)
    h = jnp.maximum(jnp.dot(w3, h.astype(bf16),
                            preferred_element_type=jnp.float32) + b3, 0.0)
    y = jnp.dot(w4, h.astype(bf16),
                preferred_element_type=jnp.float32) + b4
    if final_tanh:
        y = jnp.tanh(y)
    return y


def _decoder_kernel(grid_ref, feat_ref,
                    w1g_ref, w2_ref, b2_ref, w3_ref, b3_ref, w4_ref, b4_ref,
                    pts_ref):
    g = grid_ref[...]                                        # (3, LT) f32
    y = _conv_stack(g, feat_ref[0], w1g_ref[...], w2_ref[...], b2_ref[...],
                    w3_ref[...], b3_ref[...], w4_ref[...], b4_ref[...],
                    final_tanh=True)
    pts_ref[...] = y + g                                     # fused residual


def _fused_subnet_kernel(grid_ref, featd_ref, feate_ref, samp_ref,
                         dw1g_ref, dw2_ref, db2_ref, dw3_ref, db3_ref,
                         dw4_ref, db4_ref,
                         ew1g_ref, ew2_ref, eb2_ref, ew3_ref, eb3_ref,
                         ew4_ref, eb4_ref,
                         pts_ref, samp_out_ref, ind_ref):
    """One subnetwork in one launch: decoder (+tanh+residual), edge sampling
    (static per-batch linear map), error estimator."""
    g = grid_ref[...]                                        # (3, LT) f32
    y = _conv_stack(g, featd_ref[0], dw1g_ref[...], dw2_ref[...], db2_ref[...],
                    dw3_ref[...], db3_ref[...], dw4_ref[...], db4_ref[...],
                    final_tanh=True) + g
    pts_ref[...] = y
    # Edge sampling: sampled[:, e*q+s] = w*left + (1-w)*right as a (LT, LT)
    # linear map whose rows for padded lanes are zero (masks padded garbage).
    s = jnp.dot(y, samp_ref[0], preferred_element_type=jnp.float32)   # (3, LT)
    samp_out_ref[...] = s
    ind = _conv_stack(s, feate_ref[0], ew1g_ref[...], ew2_ref[...], eb2_ref[...],
                      ew3_ref[...], eb3_ref[...], ew4_ref[...], eb4_ref[...],
                      final_tanh=False)
    ind_ref[...] = ind                                       # (1, LT)


def _param_arrays(p):
    return [p["w1g"], p["w2"], p["b2"], p["w3"], p["b3"], p["w4"], p["b4"]]


def _param_specs(arrs):
    return [pl.BlockSpec(a.shape, lambda j, r=a.ndim: (0,) * r) for a in arrs]


def decoder_lanes(lanes, featd, p):
    """lanes: (3, B*LANE_TILE) f32; featd: (B, C1, 1) hoisted layer-1 column."""
    L = lanes.shape[1]
    arrs = _param_arrays(p)
    in_specs = [pl.BlockSpec((3, LANE_TILE), lambda j: (0, j)),
                pl.BlockSpec((1, BOTTLENECK, 1), lambda j: (j, 0, 0))]
    in_specs += _param_specs(arrs)
    return pl.pallas_call(
        _decoder_kernel,
        out_shape=jax.ShapeDtypeStruct((3, L), jnp.float32),
        grid=(L // LANE_TILE,),
        in_specs=in_specs,
        out_specs=pl.BlockSpec((3, LANE_TILE), lambda j: (0, j)),
        compiler_params=pltpu.CompilerParams(
            dimension_semantics=("parallel",),
            vmem_limit_bytes=VMEM_LIMIT),
    )(lanes, featd, *arrs)


def fused_subnet_lanes(lanes, featd, feate, samp, pd, pe):
    """Fused decoder + edge sampling + error estimator for one subnetwork."""
    L = lanes.shape[1]
    d_arrs = _param_arrays(pd)
    e_arrs = _param_arrays(pe)
    in_specs = [pl.BlockSpec((3, LANE_TILE), lambda j: (0, j)),
                pl.BlockSpec((1, BOTTLENECK, 1), lambda j: (j, 0, 0)),
                pl.BlockSpec((1, BOTTLENECK, 1), lambda j: (j, 0, 0)),
                pl.BlockSpec((1, LANE_TILE, LANE_TILE), lambda j: (j, 0, 0))]
    in_specs += _param_specs(d_arrs) + _param_specs(e_arrs)
    out_shape = (jax.ShapeDtypeStruct((3, L), jnp.float32),
                 jax.ShapeDtypeStruct((3, L), jnp.float32),
                 jax.ShapeDtypeStruct((1, L), jnp.float32))
    out_specs = (pl.BlockSpec((3, LANE_TILE), lambda j: (0, j)),
                 pl.BlockSpec((3, LANE_TILE), lambda j: (0, j)),
                 pl.BlockSpec((1, LANE_TILE), lambda j: (0, j)))
    return pl.pallas_call(
        _fused_subnet_kernel,
        out_shape=out_shape,
        grid=(L // LANE_TILE,),
        in_specs=in_specs,
        out_specs=out_specs,
        compiler_params=pltpu.CompilerParams(
            dimension_semantics=("parallel",),
            vmem_limit_bytes=VMEM_LIMIT),
    )(lanes, featd, feate, samp, *d_arrs, *e_arrs)


# --------------------------------------------------------------------------
# Lane folding helpers: one LANE_TILE per batch element, batch-major.
# --------------------------------------------------------------------------
def _init_lanes(B):
    tile = np.zeros((3, LANE_TILE), np.float32)
    tile[:, :NUM_POINTS] = SPHERE_POINTS_NORMALS[:, :3].T
    return jnp.asarray(np.tile(tile, (1, B)))                 # (3, B*LT)


def _points_from_lanes(lanes, B, n):
    C = lanes.shape[0]
    return jnp.transpose(lanes.reshape(C, B, LANE_TILE), (1, 0, 2))[:, :, :n]


def _edge_sampling_matrix(edges, quantity):
    """edges: (B, E, 2) int32 (1-indexed). Returns (B, LANE_TILE, LANE_TILE)
    linear map S with sampled = points @ S; rows >= NUM_POINTS are zero."""
    # TODO(synk): sample_points_on_edges is an external helper in the original
    # repo; test-mode even-spacing interpolation along each edge is used here.
    B, E, _ = edges.shape
    ws = jnp.arange(1, quantity + 1, dtype=jnp.float32) / (quantity + 1)   # (q,)
    oh_l = jax.nn.one_hot(edges[:, :, 0] - 1, LANE_TILE, dtype=jnp.float32)
    oh_r = jax.nn.one_hot(edges[:, :, 1] - 1, LANE_TILE, dtype=jnp.float32)
    S = (ws[None, None, :, None] * oh_l[:, :, None, :]
         + (1.0 - ws)[None, None, :, None] * oh_r[:, :, None, :])  # (B,E,q,LT)
    S = S.reshape(B, E * quantity, LANE_TILE)
    S = jnp.transpose(S, (0, 2, 1))                                # (B, LT, Eq)
    return jnp.pad(S, ((0, 0), (0, 0), (0, LANE_TILE - E * quantity)))


# --------------------------------------------------------------------------
# Parameter init (deterministic, synthetic). BN + bias folded into weights.
# --------------------------------------------------------------------------
def _init_conv_bn_stack(key, c_in, out_dim):
    c2, c4 = c_in // 2, c_in // 4
    ks = jax.random.split(key, 7)

    def conv(k, o, i):
        kw, kb = jax.random.split(k)
        return (jax.random.normal(kw, (o, i), jnp.float32) * (0.3 / np.sqrt(i)),
                jax.random.normal(kb, (o, 1), jnp.float32) * 0.01)

    def bn(k, c):
        kg, kb, km, kv = jax.random.split(k, 4)
        gamma = 1.0 + 0.05 * jax.random.normal(kg, (c, 1), jnp.float32)
        beta = 0.05 * jax.random.normal(kb, (c, 1), jnp.float32)
        mean = 0.05 * jax.random.normal(km, (c, 1), jnp.float32)
        var = 1.0 + 0.1 * jax.random.uniform(kv, (c, 1), jnp.float32)
        scale = gamma / jnp.sqrt(var + 1e-5)
        shift = beta - mean * scale
        return scale, shift

    w1, b1 = conv(ks[0], c_in, c_in);  s1, t1 = bn(ks[1], c_in)
    w2, b2 = conv(ks[2], c2, c_in);    s2, t2 = bn(ks[3], c2)
    w3, b3 = conv(ks[4], c4, c2);      s3, t3 = bn(ks[5], c4)
    w4, b4 = conv(ks[6], out_dim, c4)

    # Fold BN (eval) + conv bias: w' = s*w, b' = s*b + t.
    w1_full = s1 * w1
    return dict(
        w1g=w1_full[:, :3],                     # xyz columns (f32, VPU path)
        w1f=w1_full[:, 3:],                     # code columns (hoisted XLA matvec)
        b1=(s1 * b1 + t1),
        w2=(s2 * w2).astype(jnp.bfloat16), b2=(s2 * b2 + t2),
        w3=(s3 * w3).astype(jnp.bfloat16), b3=(s3 * b3 + t3),
        w4=w4.astype(jnp.bfloat16), b4=b4,
    )


def _init_encoder(key, d_in, hidden, feat, feat_pad):
    k1, k2, k3, k4 = jax.random.split(key, 4)
    w2 = jax.random.normal(k3, (hidden, feat), jnp.float32) / np.sqrt(hidden)
    b2 = jax.random.normal(k4, (1, feat), jnp.float32) * 0.01
    return dict(
        w1=(jax.random.normal(k1, (d_in, hidden), jnp.float32)
            / np.sqrt(d_in)).astype(jnp.bfloat16),
        b1=jax.random.normal(k2, (1, hidden), jnp.float32) * 0.01,
        w2=jnp.pad(w2, ((0, 0), (0, feat_pad - feat))).astype(jnp.bfloat16),
        b2=jnp.pad(b2, ((0, 0), (0, feat_pad - feat))),
    )


def init_params(key, d_in):
    ke, kd, kr = jax.random.split(key, 3)
    dec_keys = jax.random.split(kd, SUBNETWORKS)
    ee_keys = jax.random.split(kr, max(SUBNETWORKS - 1, 1))
    return dict(
        encoder=_init_encoder(ke, d_in, ENC_HIDDEN, FEAT_DIM, ENC_OUT_PAD),
        decoders=[_init_conv_bn_stack(k, BOTTLENECK, 3) for k in dec_keys],
        ee=[_init_conv_bn_stack(k, BOTTLENECK, 1) for k in ee_keys],
    )


# --------------------------------------------------------------------------
# Forward pass
# --------------------------------------------------------------------------
def dens_tmnet_forward(params, image, size_cls, threshold=0.1, factor=1.0):
    B = image.shape[0]

    afeature = encoder_forward(image, params["encoder"])             # (B, FEAT_DIM)
    code4recon = jnp.concatenate([afeature, size_cls], axis=1)       # (B, 61)
    codeT = code4recon.T                                             # (61, B)

    # Hoisted layer-1 feature columns: (B, C1, 1) per decoder / EE.
    featd = [(jnp.dot(p["w1f"], codeT) + p["b1"]).T[:, :, None]
             for p in params["decoders"]]
    feate = [(jnp.dot(p["w1f"], codeT) + p["b1"]).T[:, :, None]
             for p in params["ee"]]

    current_faces = jnp.tile(jnp.asarray(SPHERE_FACES)[None], (B, 1, 1))
    current_edges = jnp.tile(jnp.asarray(SPHERE_EDGES)[None], (B, 1, 1))
    lanes = _init_lanes(B)                                           # (3, B*LT)

    out_shape_points, out_sampled_mesh_points, out_indicators = [], [], []
    boundary_point_ids = jnp.zeros((B, NUM_POINTS), jnp.uint8)
    remove_masks = []

    def _result(bpids):
        return dict(mesh_coordinates_results=out_shape_points,
                    points_from_edges=out_sampled_mesh_points,
                    point_indicators=out_indicators,
                    output_edges=current_edges,
                    boundary_point_ids=bpids,
                    faces=current_faces,
                    mgn_afeature=afeature)

    for i in range(SUBNETWORKS):
        last_multi = (i == SUBNETWORKS - 1 and SUBNETWORKS > 1)
        run_ee = TRAIN_E_E and not last_multi

        if run_ee:
            samp_mat = _edge_sampling_matrix(current_edges, FACE_SAMPLES)
            lanes, samp_lanes, ind_lanes = fused_subnet_lanes(
                lanes, featd[i], feate[i], samp_mat,
                params["decoders"][i], params["ee"][i])
        else:
            lanes = decoder_lanes(lanes, featd[i], params["decoders"][i])

        out_shape_points.append(_points_from_lanes(lanes, B, NUM_POINTS))

        if last_multi:
            if remove_masks:
                union = jnp.any(jnp.stack(remove_masks, 0), 0).astype(jnp.float32)
                removed_count = union @ jnp.asarray(EDGE_INCIDENCE)   # (B, P)
                degree = jnp.asarray(SPHERE_ADJACENCY).sum(axis=1)[None, :]
                boundary_point_ids = ((removed_count > 0)
                                      & (removed_count < degree)).astype(jnp.uint8)
            return _result(boundary_point_ids)

        if run_ee:
            out_sampled_mesh_points.append(_points_from_lanes(samp_lanes, B, EQ))
            indicators = (ind_lanes.reshape(B, LANE_TILE)[:, :EQ]
                          .reshape(B, N_EDGES, FACE_SAMPLES).mean(axis=2))
            out_indicators.append(indicators)

            remove_mask = jax.nn.sigmoid(indicators) < threshold       # (B, E)
            remove_masks.append(remove_mask)
            current_edges = jnp.where(remove_mask[:, :, None],
                                      jnp.int32(1), current_edges)
            face_rm = (remove_mask.astype(jnp.float32)
                       @ jnp.asarray(SPHERE_EDGE2FACE)) > 0
            current_faces = jnp.where(face_rm[:, :, None],
                                      jnp.int32(1), current_faces)
            threshold = threshold * factor

    return _result(boundary_point_ids)


# --------------------------------------------------------------------------
if __name__ == "__main__":
    key = jax.random.PRNGKey(0)
    k_img, k_cls, k_par = jax.random.split(key, 3)

    B, H, W = 2, 16, 16
    image = jax.random.normal(k_img, (B, 3, H, W), jnp.float32)          # NCHW
    size_cls = jax.nn.one_hot(
        jax.random.randint(k_cls, (B,), 0, N_CLASSES), N_CLASSES, dtype=jnp.float32)

    params = init_params(k_par, d_in=3 * H * W)
    fwd = jax.jit(dens_tmnet_forward)
    out = fwd(params, image, size_cls)
    out = jax.block_until_ready(out)

    assert out["mgn_afeature"].shape == (B, FEAT_DIM)
    assert out["mesh_coordinates_results"][-1].shape == (B, 3, NUM_POINTS)
    assert out["point_indicators"][0].shape == (B, N_EDGES)
    assert out["points_from_edges"][0].shape == (B, 3, N_EDGES * FACE_SAMPLES)
    assert out["boundary_point_ids"].shape == (B, NUM_POINTS)
    assert bool(jnp.all(jnp.isfinite(out["mesh_coordinates_results"][-1])))
    assert bool(jnp.all(jnp.isfinite(out["point_indicators"][0])))
    print("KERNEL_OK")
</pallas_src>

<mosaic_0001>
module attributes {stable_mosaic.version = 11 : i64} {
  func.func @_encoder_kernel(%arg0: i32, %arg1: memref<8x768xbf16, #tpu.memory_space<vmem>>, %arg2: memref<768x128xbf16, #tpu.memory_space<vmem>>, %arg3: memref<1x128xf32, #tpu.memory_space<vmem>>, %arg4: memref<128x128xbf16, #tpu.memory_space<vmem>>, %arg5: memref<1x128xf32, #tpu.memory_space<vmem>>, %arg6: memref<8x128xf32, #tpu.memory_space<vmem>>) attributes {dimension_semantics = [#tpu.dimension_semantics<arbitrary>], iteration_bounds = array<i64: 1>, scalar_prefetch = 0 : i64, scratch_operands = 0 : i64, tpu.core_type = #tpu.core_type<tc>, window_params = [{pipeline_mode = #tpu.pipeline_mode<synchronous>, transform_indices = @transform_0, window_bounds = array<i64: 8, 768>}, {pipeline_mode = #tpu.pipeline_mode<synchronous>, transform_indices = @transform_1, window_bounds = array<i64: 768, 128>}, {pipeline_mode = #tpu.pipeline_mode<synchronous>, transform_indices = @transform_2, window_bounds = array<i64: 1, 128>}, {pipeline_mode = #tpu.pipeline_mode<synchronous>, transform_indices = @transform_3, window_bounds = array<i64: 128, 128>}, {pipeline_mode = #tpu.pipeline_mode<synchronous>, transform_indices = @transform_4, window_bounds = array<i64: 1, 128>}, {pipeline_mode = #tpu.pipeline_mode<synchronous>, transform_indices = @transform_5, window_bounds = array<i64: 8, 128>}]} {
    %c0 = arith.constant 0 : index
    %c0_0 = arith.constant 0 : index
    %0 = vector.load %arg1[%c0, %c0_0] : memref<8x768xbf16, #tpu.memory_space<vmem>>, vector<8x768xbf16>
    %c0_1 = arith.constant 0 : index
    %c0_2 = arith.constant 0 : index
    %1 = vector.load %arg2[%c0_1, %c0_2] : memref<768x128xbf16, #tpu.memory_space<vmem>>, vector<768x128xbf16>
    %cst = arith.constant dense<0.000000e+00> : vector<8x128xf32>
    %2 = tpu.matmul %0, %1, %cst {dimension_numbers = #tpu.dot_dimension_numbers<[1], [0], [0], [1], [0, 0, 1, 1], [], []>} : vector<8x768xbf16>, vector<768x128xbf16>, vector<8x128xf32> -> vector<8x128xf32>
    %c0_3 = arith.constant 0 : index
    %c0_4 = arith.constant 0 : index
    %3 = vector.load %arg3[%c0_3, %c0_4] : memref<1x128xf32, #tpu.memory_space<vmem>>, vector<1x128xf32>
    %4 = vector.broadcast %3 : vector<1x128xf32> to vector<8x128xf32>
    %5 = arith.addf %2, %4 : vector<8x128xf32>
    %cst_5 = arith.constant 0.000000e+00 : f32
    %6 = vector.broadcast %cst_5 : f32 to vector<8x128xf32>
    %7 = arith.maximumf %5, %6 : vector<8x128xf32>
    %8 = arith.truncf %7 : vector<8x128xf32> to vector<8x128xbf16>
    %c0_6 = arith.constant 0 : index
    %c0_7 = arith.constant 0 : index
    %9 = vector.load %arg4[%c0_6, %c0_7] : memref<128x128xbf16, #tpu.memory_space<vmem>>, vector<128x128xbf16>
    %cst_8 = arith.constant dense<0.000000e+00> : vector<8x128xf32>
    %10 = tpu.matmul %8, %9, %cst_8 {dimension_numbers = #tpu.dot_dimension_numbers<[1], [0], [0], [1], [0, 0, 1, 1], [], []>} : vector<8x128xbf16>, vector<128x128xbf16>, vector<8x128xf32> -> vector<8x128xf32>
    %c0_9 = arith.constant 0 : index
    %c0_10 = arith.constant 0 : index
    %11 = vector.load %arg5[%c0_9, %c0_10] : memref<1x128xf32, #tpu.memory_space<vmem>>, vector<1x128xf32>
    %12 = vector.broadcast %11 : vector<1x128xf32> to vector<8x128xf32>
    %13 = arith.addf %10, %12 : vector<8x128xf32>
    %c0_11 = arith.constant 0 : index
    %c0_12 = arith.constant 0 : index
    %14 = vector.load %arg6[%c0_11, %c0_12] : memref<8x128xf32, #tpu.memory_space<vmem>>, vector<8x128xf32>
    tpu.vector_store %arg6[%c0_11, %c0_12], %13 {strides = array<i32>} : memref<8x128xf32, #tpu.memory_space<vmem>>, vector<8x128xf32>,
    return
  }
  func.func @transform_0(%arg0: i32) -> (i32, i32) {
    %c0_i32 = arith.constant 0 : i32
    %c0_i32_0 = arith.constant 0 : i32
    %c0_i32_1 = arith.constant 0 : i32
    return %c0_i32, %c0_i32_0 : i32, i32
  }
  func.func @transform_1(%arg0: i32) -> (i32, i32) {
    %c0_i32 = arith.constant 0 : i32
    %c0_i32_0 = arith.constant 0 : i32
    %c0_i32_1 = arith.constant 0 : i32
    return %c0_i32, %c0_i32_0 : i32, i32
  }
  func.func @transform_2(%arg0: i32) -> (i32, i32) {
    %c0_i32 = arith.constant 0 : i32
    %c0_i32_0 = arith.constant 0 : i32
    %c0_i32_1 = arith.constant 0 : i32
    return %c0_i32, %c0_i32_0 : i32, i32
  }
  func.func @transform_3(%arg0: i32) -> (i32, i32) {
    %c0_i32 = arith.constant 0 : i32
    %c0_i32_0 = arith.constant 0 : i32
    %c0_i32_1 = arith.constant 0 : i32
    return %c0_i32, %c0_i32_0 : i32, i32
  }
  func.func @transform_4(%arg0: i32) -> (i32, i32) {
    %c0_i32 = arith.constant 0 : i32
    %c0_i32_0 = arith.constant 0 : i32
    %c0_i32_1 = arith.constant 0 : i32
    return %c0_i32, %c0_i32_0 : i32, i32
  }
  func.func @transform_5(%arg0: i32) -> (i32, i32) {
    %c0_i32 = arith.constant 0 : i32
    %c0_i32_0 = arith.constant 0 : i32
    %c0_i32_1 = arith.constant 0 : i32
    return %c0_i32, %c0_i32_0 : i32, i32
  }
}

module attributes {stable_mosaic.version = 11 : i64} {
  func.func @_decoder_kernel(%arg0: i32, %arg1: memref<3x128xf32, #tpu.memory_space<vmem>>, %arg2: memref<1x64x1xf32, #tpu.memory_space<vmem>>, %arg3: memref<64x3xf32, #tpu.memory_space<vmem>>, %arg4: memref<32x64xbf16, #tpu.memory_space<vmem>>, %arg5: memref<32x1xf32, #tpu.memory_space<vmem>>, %arg6: memref<16x32xbf16, #tpu.memory_space<vmem>>, %arg7: memref<16x1xf32, #tpu.memory_space<vmem>>, %arg8: memref<3x16xbf16, #tpu.memory_space<vmem>>, %arg9: memref<3x1xf32, #tpu.memory_space<vmem>>, %arg10: memref<3x128xf32, #tpu.memory_space<vmem>>) attributes {dimension_semantics = [#tpu.dimension_semantics<parallel>], iteration_bounds = array<i64: 2>, scalar_prefetch = 0 : i64, scratch_operands = 0 : i64, tpu.core_type = #tpu.core_type<tc>, window_params = [{transform_indices = @transform_0, window_bounds = array<i64: 3, 128>}, {transform_indices = @transform_1, window_bounds = array<i64: 1, 64, 1>}, {pipeline_mode = #tpu.pipeline_mode<synchronous>, transform_indices = @transform_2, window_bounds = array<i64: 64, 3>}, {pipeline_mode = #tpu.pipeline_mode<synchronous>, transform_indices = @transform_3, window_bounds = array<i64: 32, 64>}, {pipeline_mode = #tpu.pipeline_mode<synchronous>, transform_indices = @transform_4, window_bounds = array<i64: 32, 1>}, {pipeline_mode = #tpu.pipeline_mode<synchronous>, transform_indices = @transform_5, window_bounds = array<i64: 16, 32>}, {pipeline_mode = #tpu.pipeline_mode<synchronous>, transform_indices = @transform_6, window_bounds = array<i64: 16, 1>}, {pipeline_mode = #tpu.pipeline_mode<synchronous>, transform_indices = @transform_7, window_bounds = array<i64: 3, 16>}, {pipeline_mode = #tpu.pipeline_mode<synchronous>, transform_indices = @transform_8, window_bounds = array<i64: 3, 1>}, {transform_indices = @transform_9, window_bounds = array<i64: 3, 128>}]} {
    %c0 = arith.constant 0 : index
    %c0_0 = arith.constant 0 : index
    %0 = vector.load %arg1[%c0, %c0_0] : memref<3x128xf32, #tpu.memory_space<vmem>>, vector<3x128xf32>
    %c0_1 = arith.constant 0 : index
    %c0_2 = arith.constant 0 : index
    %c0_3 = arith.constant 0 : index
    %1 = vector.load %arg2[%c0_1, %c0_2, %c0_3] : memref<1x64x1xf32, #tpu.memory_space<vmem>>, vector<1x64x1xf32>
    %2 = vector.shape_cast %1 : vector<1x64x1xf32> to vector<64x1xf32>
    %c0_4 = arith.constant 0 : index
    %c0_5 = arith.constant 0 : index
    %3 = vector.load %arg3[%c0_4, %c0_5] : memref<64x3xf32, #tpu.memory_space<vmem>>, vector<64x3xf32>
    %c0_6 = arith.constant 0 : index
    %c0_7 = arith.constant 0 : index
    %4 = vector.load %arg4[%c0_6, %c0_7] : memref<32x64xbf16, #tpu.memory_space<vmem>>, vector<32x64xbf16>
    %c0_8 = arith.constant 0 : index
    %c0_9 = arith.constant 0 : index
    %5 = vector.load %arg5[%c0_8, %c0_9] : memref<32x1xf32, #tpu.memory_space<vmem>>, vector<32x1xf32>
    %c0_10 = arith.constant 0 : index
    %c0_11 = arith.constant 0 : index
    %6 = vector.load %arg6[%c0_10, %c0_11] : memref<16x32xbf16, #tpu.memory_space<vmem>>, vector<16x32xbf16>
    %c0_12 = arith.constant 0 : index
    %c0_13 = arith.constant 0 : index
    %7 = vector.load %arg7[%c0_12, %c0_13] : memref<16x1xf32, #tpu.memory_space<vmem>>, vector<16x1xf32>
    %c0_14 = arith.constant 0 : index
    %c0_15 = arith.constant 0 : index
    %8 = vector.load %arg8[%c0_14, %c0_15] : memref<3x16xbf16, #tpu.memory_space<vmem>>, vector<3x16xbf16>
    %c0_16 = arith.constant 0 : index
    %c0_17 = arith.constant 0 : index
    %9 = vector.load %arg9[%c0_16, %c0_17] : memref<3x1xf32, #tpu.memory_space<vmem>>, vector<3x1xf32>
    %10 = vector.extract_strided_slice %3 {offsets = [0, 0], sizes = [64, 1], strides = [1, 1]} : vector<64x3xf32> to vector<64x1xf32>
    %11 = vector.extract_strided_slice %0 {offsets = [0, 0], sizes = [1, 128], strides = [1, 1]} : vector<3x128xf32> to vector<1x128xf32>
    %12 = vector.broadcast %10 : vector<64x1xf32> to vector<64x128xf32>
    %13 = vector.broadcast %11 : vector<1x128xf32> to vector<64x128xf32>
    %14 = arith.mulf %12, %13 : vector<64x128xf32>
    %15 = vector.extract_strided_slice %3 {offsets = [0, 1], sizes = [64, 1], strides = [1, 1]} : vector<64x3xf32> to vector<64x1xf32>
    %16 = vector.extract_strided_slice %0 {offsets = [1, 0], sizes = [1, 128], strides = [1, 1]} : vector<3x128xf32> to vector<1x128xf32>
    %17 = vector.broadcast %15 : vector<64x1xf32> to vector<64x128xf32>
    %18 = vector.broadcast %16 : vector<1x128xf32> to vector<64x128xf32>
    %19 = arith.mulf %17, %18 : vector<64x128xf32>
    %20 = arith.addf %14, %19 : vector<64x128xf32>
    %21 = vector.extract_strided_slice %3 {offsets = [0, 2], sizes = [64, 1], strides = [1, 1]} : vector<64x3xf32> to vector<64x1xf32>
    %22 = vector.extract_strided_slice %0 {offsets = [2, 0], sizes = [1, 128], strides = [1, 1]} : vector<3x128xf32> to vector<1x128xf32>
    %23 = vector.broadcast %21 : vector<64x1xf32> to vector<64x128xf32>
    %24 = vector.broadcast %22 : vector<1x128xf32> to vector<64x128xf32>
    %25 = arith.mulf %23, %24 : vector<64x128xf32>
    %26 = arith.addf %20, %25 : vector<64x128xf32>
    %27 = vector.broadcast %2 : vector<64x1xf32> to vector<64x128xf32>
    %28 = arith.addf %26, %27 : vector<64x128xf32>
    %cst = arith.constant 0.000000e+00 : f32
    %29 = vector.broadcast %cst : f32 to vector<64x128xf32>
    %30 = arith.maximumf %28, %29 : vector<64x128xf32>
    %31 = arith.truncf %30 : vector<64x128xf32> to vector<64x128xbf16>
    %cst_18 = arith.constant dense<0.000000e+00> : vector<32x128xf32>
    %32 = tpu.matmul %4, %31, %cst_18 {dimension_numbers = #tpu.dot_dimension_numbers<[1], [0], [0], [1], [0, 0, 1, 1], [], []>} : vector<32x64xbf16>, vector<64x128xbf16>, vector<32x128xf32> -> vector<32x128xf32>
    %33 = vector.broadcast %5 : vector<32x1xf32> to vector<32x128xf32>
    %34 = arith.addf %32, %33 : vector<32x128xf32>
    %cst_19 = arith.constant 0.000000e+00 : f32
    %35 = vector.broadcast %cst_19 : f32 to vector<32x128xf32>
    %36 = arith.maximumf %34, %35 : vector<32x128xf32>
    %37 = arith.truncf %36 : vector<32x128xf32> to vector<32x128xbf16>
    %cst_20 = arith.constant dense<0.000000e+00> : vector<16x128xf32>
    %38 = tpu.matmul %6, %37, %cst_20 {dimension_numbers = #tpu.dot_dimension_numbers<[1], [0], [0], [1], [0, 0, 1, 1], [], []>} : vector<16x32xbf16>, vector<32x128xbf16>, vector<16x128xf32> -> vector<16x128xf32>
    %39 = vector.broadcast %7 : vector<16x1xf32> to vector<16x128xf32>
    %40 = arith.addf %38, %39 : vector<16x128xf32>
    %cst_21 = arith.constant 0.000000e+00 : f32
    %41 = vector.broadcast %cst_21 : f32 to vector<16x128xf32>
    %42 = arith.maximumf %40, %41 : vector<16x128xf32>
    %43 = arith.truncf %42 : vector<16x128xf32> to vector<16x128xbf16>
    %cst_22 = arith.constant dense<0.000000e+00> : vector<3x128xf32>
    %44 = tpu.matmul %8, %43, %cst_22 {dimension_numbers = #tpu.dot_dimension_numbers<[1], [0], [0], [1], [0, 0, 1, 1], [], []>} : vector<3x16xbf16>, vector<16x128xbf16>, vector<3x128xf32> -> vector<3x128xf32>
    %45 = vector.broadcast %9 : vector<3x1xf32> to vector<3x128xf32>
    %46 = arith.addf %44, %45 : vector<3x128xf32>
    %47 = math.tanh %46 : vector<3x128xf32>
    %48 = arith.addf %47, %0 : vector<3x128xf32>
    %c0_23 = arith.constant 0 : index
    %c0_24 = arith.constant 0 : index
    %49 = vector.load %arg10[%c0_23, %c0_24] : memref<3x128xf32, #tpu.memory_space<vmem>>, vector<3x128xf32>
    tpu.vector_store %arg10[%c0_23, %c0_24], %48 {strides = array<i32>} : memref<3x128xf32, #tpu.memory_space<vmem>>, vector<3x128xf32>,
    return
  }
  func.func @transform_0(%arg0: i32) -> (i32, i32) {
    %c0_i32 = arith.constant 0 : i32
    %c0_i32_0 = arith.constant 0 : i32
    return %c0_i32, %arg0 : i32, i32
  }
  func.func @transform_1(%arg0: i32) -> (i32, i32, i32) {
    %c0_i32 = arith.constant 0 : i32
    %c0_i32_0 = arith.constant 0 : i32
    %c0_i32_1 = arith.constant 0 : i32
    return %arg0, %c0_i32, %c0_i32_0 : i32, i32, i32
  }
  func.func @transform_2(%arg0: i32) -> (i32, i32) {
    %c0_i32 = arith.constant 0 : i32
    %c0_i32_0 = arith.constant 0 : i32
    %c0_i32_1 = arith.constant 0 : i32
    return %c0_i32, %c0_i32_0 : i32, i32
  }
  func.func @transform_3(%arg0: i32) -> (i32, i32) {
    %c0_i32 = arith.constant 0 : i32
    %c0_i32_0 = arith.constant 0 : i32
    %c0_i32_1 = arith.constant 0 : i32
    return %c0_i32, %c0_i32_0 : i32, i32
  }
  func.func @transform_4(%arg0: i32) -> (i32, i32) {
    %c0_i32 = arith.constant 0 : i32
    %c0_i32_0 = arith.constant 0 : i32
    %c0_i32_1 = arith.constant 0 : i32
    return %c0_i32, %c0_i32_0 : i32, i32
  }
  func.func @transform_5(%arg0: i32) -> (i32, i32) {
    %c0_i32 = arith.constant 0 : i32
    %c0_i32_0 = arith.constant 0 : i32
    %c0_i32_1 = arith.constant 0 : i32
    return %c0_i32, %c0_i32_0 : i32, i32
  }
  func.func @transform_6(%arg0: i32) -> (i32, i32) {
    %c0_i32 = arith.constant 0 : i32
    %c0_i32_0 = arith.constant 0 : i32
    %c0_i32_1 = arith.constant 0 : i32
    return %c0_i32, %c0_i32_0 : i32, i32
  }
  func.func @transform_7(%arg0: i32) -> (i32, i32) {
    %c0_i32 = arith.constant 0 : i32
    %c0_i32_0 = arith.constant 0 : i32
    %c0_i32_1 = arith.constant 0 : i32
    return %c0_i32, %c0_i32_0 : i32, i32
  }
  func.func @transform_8(%arg0: i32) -> (i32, i32) {
    %c0_i32 = arith.constant 0 : i32
    %c0_i32_0 = arith.constant 0 : i32
    %c0_i32_1 = arith.constant 0 : i32
    return %c0_i32, %c0_i32_0 : i32, i32
  }
  func.func @transform_9(%arg0: i32) -> (i32, i32) {
    %c0_i32 = arith.constant 0 : i32
    %c0_i32_0 = arith.constant 0 : i32
    return %c0_i32, %arg0 : i32, i32
  }
}

module attributes {stable_mosaic.version = 11 : i64} {
  func.func @_fused_subnet_kernel(%arg0: i32, %arg1: memref<3x128xf32, #tpu.memory_space<vmem>>, %arg2: memref<1x64x1xf32, #tpu.memory_space<vmem>>, %arg3: memref<1x64x1xf32, #tpu.memory_space<vmem>>, %arg4: memref<1x128x128xf32, #tpu.memory_space<vmem>>, %arg5: memref<64x3xf32, #tpu.memory_space<vmem>>, %arg6: memref<32x64xbf16, #tpu.memory_space<vmem>>, %arg7: memref<32x1xf32, #tpu.memory_space<vmem>>, %arg8: memref<16x32xbf16, #tpu.memory_space<vmem>>, %arg9: memref<16x1xf32, #tpu.memory_space<vmem>>, %arg10: memref<3x16xbf16, #tpu.memory_space<vmem>>, %arg11: memref<3x1xf32, #tpu.memory_space<vmem>>, %arg12: memref<64x3xf32, #tpu.memory_space<vmem>>, %arg13: memref<32x64xbf16, #tpu.memory_space<vmem>>, %arg14: memref<32x1xf32, #tpu.memory_space<vmem>>, %arg15: memref<16x32xbf16, #tpu.memory_space<vmem>>, %arg16: memref<16x1xf32, #tpu.memory_space<vmem>>, %arg17: memref<1x16xbf16, #tpu.memory_space<vmem>>, %arg18: memref<1x1xf32, #tpu.memory_space<vmem>>, %arg19: memref<3x128xf32, #tpu.memory_space<vmem>>, %arg20: memref<3x128xf32, #tpu.memory_space<vmem>>, %arg21: memref<1x128xf32, #tpu.memory_space<vmem>>) attributes {dimension_semantics = [#tpu.dimension_semantics<parallel>], iteration_bounds = array<i64: 2>, scalar_prefetch = 0 : i64, scratch_operands = 0 : i64, tpu.core_type = #tpu.core_type<tc>, window_params = [{transform_indices = @transform_0, window_bounds = array<i64: 3, 128>}, {transform_indices = @transform_1, window_bounds = array<i64: 1, 64, 1>}, {transform_indices = @transform_2, window_bounds = array<i64: 1, 64, 1>}, {transform_indices = @transform_3, window_bounds = array<i64: 1, 128, 128>}, {pipeline_mode = #tpu.pipeline_mode<synchronous>, transform_indices = @transform_4, window_bounds = array<i64: 64, 3>}, {pipeline_mode = #tpu.pipeline_mode<synchronous>, transform_indices = @transform_5, window_bounds = array<i64: 32, 64>}, {pipeline_mode = #tpu.pipeline_mode<synchronous>, transform_indices = @transform_6, window_bounds = array<i64: 32, 1>}, {pipeline_mode = #tpu.pipeline_mode<synchronous>, transform_indices = @transform_7, window_bounds = array<i64: 16, 32>}, {pipeline_mode = #tpu.pipeline_mode<synchronous>, transform_indices = @transform_8, window_bounds = array<i64: 16, 1>}, {pipeline_mode = #tpu.pipeline_mode<synchronous>, transform_indices = @transform_9, window_bounds = array<i64: 3, 16>}, {pipeline_mode = #tpu.pipeline_mode<synchronous>, transform_indices = @transform_10, window_bounds = array<i64: 3, 1>}, {pipeline_mode = #tpu.pipeline_mode<synchronous>, transform_indices = @transform_11, window_bounds = array<i64: 64, 3>}, {pipeline_mode = #tpu.pipeline_mode<synchronous>, transform_indices = @transform_12, window_bounds = array<i64: 32, 64>}, {pipeline_mode = #tpu.pipeline_mode<synchronous>, transform_indices = @transform_13, window_bounds = array<i64: 32, 1>}, {pipeline_mode = #tpu.pipeline_mode<synchronous>, transform_indices = @transform_14, window_bounds = array<i64: 16, 32>}, {pipeline_mode = #tpu.pipeline_mode<synchronous>, transform_indices = @transform_15, window_bounds = array<i64: 16, 1>}, {pipeline_mode = #tpu.pipeline_mode<synchronous>, transform_indices = @transform_16, window_bounds = array<i64: 1, 16>}, {pipeline_mode = #tpu.pipeline_mode<synchronous>, transform_indices = @transform_17, window_bounds = array<i64: 1, 1>}, {transform_indices = @transform_18, window_bounds = array<i64: 3, 128>}, {transform_indices = @transform_19, window_bounds = array<i64: 3, 128>}, {transform_indices = @transform_20, window_bounds = array<i64: 1, 128>}]} {
    %c0 = arith.constant 0 : index
    %c0_0 = arith.constant 0 : index
    %0 = vector.load %arg1[%c0, %c0_0] : memref<3x128xf32, #tpu.memory_space<vmem>>, vector<3x128xf32>
    %c0_1 = arith.constant 0 : index
    %c0_2 = arith.constant 0 : index
    %c0_3 = arith.constant 0 : index
    %1 = vector.load %arg2[%c0_1, %c0_2, %c0_3] : memref<1x64x1xf32, #tpu.memory_space<vmem>>, vector<1x64x1xf32>
    %2 = vector.shape_cast %1 : vector<1x64x1xf32> to vector<64x1xf32>
    %c0_4 = arith.constant 0 : index
    %c0_5 = arith.constant 0 : index
    %3 = vector.load %arg5[%c0_4, %c0_5] : memref<64x3xf32, #tpu.memory_space<vmem>>, vector<64x3xf32>
    %c0_6 = arith.constant 0 : index
    %c0_7 = arith.constant 0 : index
    %4 = vector.load %arg6[%c0_6, %c0_7] : memref<32x64xbf16, #tpu.memory_space<vmem>>, vector<32x64xbf16>
    %c0_8 = arith.constant 0 : index
    %c0_9 = arith.constant 0 : index
    %5 = vector.load %arg7[%c0_8, %c0_9] : memref<32x1xf32, #tpu.memory_space<vmem>>, vector<32x1xf32>
    %c0_10 = arith.constant 0 : index
    %c0_11 = arith.constant 0 : index
    %6 = vector.load %arg8[%c0_10, %c0_11] : memref<16x32xbf16, #tpu.memory_space<vmem>>, vector<16x32xbf16>
    %c0_12 = arith.constant 0 : index
    %c0_13 = arith.constant 0 : index
    %7 = vector.load %arg9[%c0_12, %c0_13] : memref<16x1xf32, #tpu.memory_space<vmem>>, vector<16x1xf32>
    %c0_14 = arith.constant 0 : index
    %c0_15 = arith.constant 0 : index
    %8 = vector.load %arg10[%c0_14, %c0_15] : memref<3x16xbf16, #tpu.memory_space<vmem>>, vector<3x16xbf16>
    %c0_16 = arith.constant 0 : index
    %c0_17 = arith.constant 0 : index
    %9 = vector.load %arg11[%c0_16, %c0_17] : memref<3x1xf32, #tpu.memory_space<vmem>>, vector<3x1xf32>
    %10 = vector.extract_strided_slice %3 {offsets = [0, 0], sizes = [64, 1], strides = [1, 1]} : vector<64x3xf32> to vector<64x1xf32>
    %11 = vector.extract_strided_slice %0 {offsets = [0, 0], sizes = [1, 128], strides = [1, 1]} : vector<3x128xf32> to vector<1x128xf32>
    %12 = vector.broadcast %10 : vector<64x1xf32> to vector<64x128xf32>
    %13 = vector.broadcast %11 : vector<1x128xf32> to vector<64x128xf32>
    %14 = arith.mulf %12, %13 : vector<64x128xf32>
    %15 = vector.extract_strided_slice %3 {offsets = [0, 1], sizes = [64, 1], strides = [1, 1]} : vector<64x3xf32> to vector<64x1xf32>
    %16 = vector.extract_strided_slice %0 {offsets = [1, 0], sizes = [1, 128], strides = [1, 1]} : vector<3x128xf32> to vector<1x128xf32>
    %17 = vector.broadcast %15 : vector<64x1xf32> to vector<64x128xf32>
    %18 = vector.broadcast %16 : vector<1x128xf32> to vector<64x128xf32>
    %19 = arith.mulf %17, %18 : vector<64x128xf32>
    %20 = arith.addf %14, %19 : vector<64x128xf32>
    %21 = vector.extract_strided_slice %3 {offsets = [0, 2], sizes = [64, 1], strides = [1, 1]} : vector<64x3xf32> to vector<64x1xf32>
    %22 = vector.extract_strided_slice %0 {offsets = [2, 0], sizes = [1, 128], strides = [1, 1]} : vector<3x128xf32> to vector<1x128xf32>
    %23 = vector.broadcast %21 : vector<64x1xf32> to vector<64x128xf32>
    %24 = vector.broadcast %22 : vector<1x128xf32> to vector<64x128xf32>
    %25 = arith.mulf %23, %24 : vector<64x128xf32>
    %26 = arith.addf %20, %25 : vector<64x128xf32>
    %27 = vector.broadcast %2 : vector<64x1xf32> to vector<64x128xf32>
    %28 = arith.addf %26, %27 : vector<64x128xf32>
    %cst = arith.constant 0.000000e+00 : f32
    %29 = vector.broadcast %cst : f32 to vector<64x128xf32>
    %30 = arith.maximumf %28, %29 : vector<64x128xf32>
    %31 = arith.truncf %30 : vector<64x128xf32> to vector<64x128xbf16>
    %cst_18 = arith.constant dense<0.000000e+00> : vector<32x128xf32>
    %32 = tpu.matmul %4, %31, %cst_18 {dimension_numbers = #tpu.dot_dimension_numbers<[1], [0], [0], [1], [0, 0, 1, 1], [], []>} : vector<32x64xbf16>, vector<64x128xbf16>, vector<32x128xf32> -> vector<32x128xf32>
    %33 = vector.broadcast %5 : vector<32x1xf32> to vector<32x128xf32>
    %34 = arith.addf %32, %33 : vector<32x128xf32>
    %cst_19 = arith.constant 0.000000e+00 : f32
    %35 = vector.broadcast %cst_19 : f32 to vector<32x128xf32>
    %36 = arith.maximumf %34, %35 : vector<32x128xf32>
    %37 = arith.truncf %36 : vector<32x128xf32> to vector<32x128xbf16>
    %cst_20 = arith.constant dense<0.000000e+00> : vector<16x128xf32>
    %38 = tpu.matmul %6, %37, %cst_20 {dimension_numbers = #tpu.dot_dimension_numbers<[1], [0], [0], [1], [0, 0, 1, 1], [], []>} : vector<16x32xbf16>, vector<32x128xbf16>, vector<16x128xf32> -> vector<16x128xf32>
    %39 = vector.broadcast %7 : vector<16x1xf32> to vector<16x128xf32>
    %40 = arith.addf %38, %39 : vector<16x128xf32>
    %cst_21 = arith.constant 0.000000e+00 : f32
    %41 = vector.broadcast %cst_21 : f32 to vector<16x128xf32>
    %42 = arith.maximumf %40, %41 : vector<16x128xf32>
    %43 = arith.truncf %42 : vector<16x128xf32> to vector<16x128xbf16>
    %cst_22 = arith.constant dense<0.000000e+00> : vector<3x128xf32>
    %44 = tpu.matmul %8, %43, %cst_22 {dimension_numbers = #tpu.dot_dimension_numbers<[1], [0], [0], [1], [0, 0, 1, 1], [], []>} : vector<3x16xbf16>, vector<16x128xbf16>, vector<3x128xf32> -> vector<3x128xf32>
    %45 = vector.broadcast %9 : vector<3x1xf32> to vector<3x128xf32>
    %46 = arith.addf %44, %45 : vector<3x128xf32>
    %47 = math.tanh %46 : vector<3x128xf32>
    %48 = arith.addf %47, %0 : vector<3x128xf32>
    %c0_23 = arith.constant 0 : index
    %c0_24 = arith.constant 0 : index
    %49 = vector.load %arg19[%c0_23, %c0_24] : memref<3x128xf32, #tpu.memory_space<vmem>>, vector<3x128xf32>
    tpu.vector_store %arg19[%c0_23, %c0_24], %48 {strides = array<i32>} : memref<3x128xf32, #tpu.memory_space<vmem>>, vector<3x128xf32>,
    %c0_25 = arith.constant 0 : index
    %c0_26 = arith.constant 0 : index
    %c0_27 = arith.constant 0 : index
    %50 = vector.load %arg4[%c0_25, %c0_26, %c0_27] : memref<1x128x128xf32, #tpu.memory_space<vmem>>, vector<1x128x128xf32>
    %51 = vector.shape_cast %50 : vector<1x128x128xf32> to vector<128x128xf32>
    %cst_28 = arith.constant dense<0.000000e+00> : vector<3x128xf32>
    %52 = tpu.matmul %48, %51, %cst_28 {dimension_numbers = #tpu.dot_dimension_numbers<[1], [0], [0], [1], [0, 0, 1, 1], [], []>} : vector<3x128xf32>, vector<128x128xf32>, vector<3x128xf32> -> vector<3x128xf32>
    %c0_29 = arith.constant 0 : index
    %c0_30 = arith.constant 0 : index
    %53 = vector.load %arg20[%c0_29, %c0_30] : memref<3x128xf32, #tpu.memory_space<vmem>>, vector<3x128xf32>
    tpu.vector_store %arg20[%c0_29, %c0_30], %52 {strides = array<i32>} : memref<3x128xf32, #tpu.memory_space<vmem>>, vector<3x128xf32>,
    %c0_31 = arith.constant 0 : index
    %c0_32 = arith.constant 0 : index
    %c0_33 = arith.constant 0 : index
    %54 = vector.load %arg3[%c0_31, %c0_32, %c0_33] : memref<1x64x1xf32, #tpu.memory_space<vmem>>, vector<1x64x1xf32>
    %55 = vector.shape_cast %54 : vector<1x64x1xf32> to vector<64x1xf32>
    %c0_34 = arith.constant 0 : index
    %c0_35 = arith.constant 0 : index
    %56 = vector.load %arg12[%c0_34, %c0_35] : memref<64x3xf32, #tpu.memory_space<vmem>>, vector<64x3xf32>
    %c0_36 = arith.constant 0 : index
    %c0_37 = arith.constant 0 : index
    %57 = vector.load %arg13[%c0_36, %c0_37] : memref<32x64xbf16, #tpu.memory_space<vmem>>, vector<32x64xbf16>
    %c0_38 = arith.constant 0 : index
    %c0_39 = arith.constant 0 : index
    %58 = vector.load %arg14[%c0_38, %c0_39] : memref<32x1xf32, #tpu.memory_space<vmem>>, vector<32x1xf32>
    %c0_40 = arith.constant 0 : index
    %c0_41 = arith.constant 0 : index
    %59 = vector.load %arg15[%c0_40, %c0_41] : memref<16x32xbf16, #tpu.memory_space<vmem>>, vector<16x32xbf16>
    %c0_42 = arith.constant 0 : index
    %c0_43 = arith.constant 0 : index
    %60 = vector.load %arg16[%c0_42, %c0_43] : memref<16x1xf32, #tpu.memory_space<vmem>>, vector<16x1xf32>
    %c0_44 = arith.constant 0 : index
    %c0_45 = arith.constant 0 : index
    %61 = vector.load %arg17[%c0_44, %c0_45] : memref<1x16xbf16, #tpu.memory_space<vmem>>, vector<1x16xbf16>
    %c0_46 = arith.constant 0 : index
    %c0_47 = arith.constant 0 : index
    %62 = vector.load %arg18[%c0_46, %c0_47] : memref<1x1xf32, #tpu.memory_space<vmem>>, vector<1x1xf32>
    %63 = vector.extract_strided_slice %56 {offsets = [0, 0], sizes = [64, 1], strides = [1, 1]} : vector<64x3xf32> to vector<64x1xf32>
    %64 = vector.extract_strided_slice %52 {offsets = [0, 0], sizes = [1, 128], strides = [1, 1]} : vector<3x128xf32> to vector<1x128xf32>
    %65 = vector.broadcast %63 : vector<64x1xf32> to vector<64x128xf32>
    %66 = vector.broadcast %64 : vector<1x128xf32> to vector<64x128xf32>
    %67 = arith.mulf %65, %66 : vector<64x128xf32>
    %68 = vector.extract_strided_slice %56 {offsets = [0, 1], sizes = [64, 1], strides = [1, 1]} : vector<64x3xf32> to vector<64x1xf32>
    %69 = vector.extract_strided_slice %52 {offsets = [1, 0], sizes = [1, 128], strides = [1, 1]} : vector<3x128xf32> to vector<1x128xf32>
    %70 = vector.broadcast %68 : vector<64x1xf32> to vector<64x128xf32>
    %71 = vector.broadcast %69 : vector<1x128xf32> to vector<64x128xf32>
    %72 = arith.mulf %70, %71 : vector<64x128xf32>
    %73 = arith.addf %67, %72 : vector<64x128xf32>
    %74 = vector.extract_strided_slice %56 {offsets = [0, 2], sizes = [64, 1], strides = [1, 1]} : vector<64x3xf32> to vector<64x1xf32>
    %75 = vector.extract_strided_slice %52 {offsets = [2, 0], sizes = [1, 128], strides = [1, 1]} : vector<3x128xf32> to vector<1x128xf32>
    %76 = vector.broadcast %74 : vector<64x1xf32> to vector<64x128xf32>
    %77 = vector.broadcast %75 : vector<1x128xf32> to vector<64x128xf32>
    %78 = arith.mulf %76, %77 : vector<64x128xf32>
    %79 = arith.addf %73, %78 : vector<64x128xf32>
    %80 = vector.broadcast %55 : vector<64x1xf32> to vector<64x128xf32>
    %81 = arith.addf %79, %80 : vector<64x128xf32>
    %cst_48 = arith.constant 0.000000e+00 : f32
    %82 = vector.broadcast %cst_48 : f32 to vector<64x128xf32>
    %83 = arith.maximumf %81, %82 : vector<64x128xf32>
    %84 = arith.truncf %83 : vector<64x128xf32> to vector<64x128xbf16>
    %cst_49 = arith.constant dense<0.000000e+00> : vector<32x128xf32>
    %85 = tpu.matmul %57, %84, %cst_49 {dimension_numbers = #tpu.dot_dimension_numbers<[1], [0], [0], [1], [0, 0, 1, 1], [], []>} : vector<32x64xbf16>, vector<64x128xbf16>, vector<32x128xf32> -> vector<32x128xf32>
    %86 = vector.broadcast %58 : vector<32x1xf32> to vector<32x128xf32>
    %87 = arith.addf %85, %86 : vector<32x128xf32>
    %cst_50 = arith.constant 0.000000e+00 : f32
    %88 = vector.broadcast %cst_50 : f32 to vector<32x128xf32>
    %89 = arith.maximumf %87, %88 : vector<32x128xf32>
    %90 = arith.truncf %89 : vector<32x128xf32> to vector<32x128xbf16>
    %cst_51 = arith.constant dense<0.000000e+00> : vector<16x128xf32>
    %91 = tpu.matmul %59, %90, %cst_51 {dimension_numbers = #tpu.dot_dimension_numbers<[1], [0], [0], [1], [0, 0, 1, 1], [], []>} : vector<16x32xbf16>, vector<32x128xbf16>, vector<16x128xf32> -> vector<16x128xf32>
    %92 = vector.broadcast %60 : vector<16x1xf32> to vector<16x128xf32>
    %93 = arith.addf %91, %92 : vector<16x128xf32>
    %cst_52 = arith.constant 0.000000e+00 : f32
    %94 = vector.broadcast %cst_52 : f32 to vector<16x128xf32>
    %95 = arith.maximumf %93, %94 : vector<16x128xf32>
    %96 = arith.truncf %95 : vector<16x128xf32> to vector<16x128xbf16>
    %cst_53 = arith.constant dense<0.000000e+00> : vector<1x128xf32>
    %97 = tpu.matmul %61, %96, %cst_53 {dimension_numbers = #tpu.dot_dimension_numbers<[1], [0], [0], [1], [0, 0, 1, 1], [], []>} : vector<1x16xbf16>, vector<16x128xbf16>, vector<1x128xf32> -> vector<1x128xf32>
    %98 = vector.broadcast %62 : vector<1x1xf32> to vector<1x128xf32>
    %99 = arith.addf %97, %98 : vector<1x128xf32>
    %c0_54 = arith.constant 0 : index
    %c0_55 = arith.constant 0 : index
    %100 = vector.load %arg21[%c0_54, %c0_55] : memref<1x128xf32, #tpu.memory_space<vmem>>, vector<1x128xf32>
    tpu.vector_store %arg21[%c0_54, %c0_55], %99 {strides = array<i32>} : memref<1x128xf32, #tpu.memory_space<vmem>>, vector<1x128xf32>,
    return
  }
  func.func @transform_0(%arg0: i32) -> (i32, i32) {
    %c0_i32 = arith.constant 0 : i32
    %c0_i32_0 = arith.constant 0 : i32
    return %c0_i32, %arg0 : i32, i32
  }
  func.func @transform_1(%arg0: i32) -> (i32, i32, i32) {
    %c0_i32 = arith.constant 0 : i32
    %c0_i32_0 = arith.constant 0 : i32
    %c0_i32_1 = arith.constant 0 : i32
    return %arg0, %c0_i32, %c0_i32_0 : i32, i32, i32
  }
  func.func @transform_2(%arg0: i32) -> (i32, i32, i32) {
    %c0_i32 = arith.constant 0 : i32
    %c0_i32_0 = arith.constant 0 : i32
    %c0_i32_1 = arith.constant 0 : i32
    return %arg0, %c0_i32, %c0_i32_0 : i32, i32, i32
  }
  func.func @transform_3(%arg0: i32) -> (i32, i32, i32) {
    %c0_i32 = arith.constant 0 : i32
    %c0_i32_0 = arith.constant 0 : i32
    %c0_i32_1 = arith.constant 0 : i32
    return %arg0, %c0_i32, %c0_i32_0 : i32, i32, i32
  }
  func.func @transform_4(%arg0: i32) -> (i32, i32) {
    %c0_i32 = arith.constant 0 : i32
    %c0_i32_0 = arith.constant 0 : i32
    %c0_i32_1 = arith.constant 0 : i32
    return %c0_i32, %c0_i32_0 : i32, i32
  }
  func.func @transform_5(%arg0: i32) -> (i32, i32) {
    %c0_i32 = arith.constant 0 : i32
    %c0_i32_0 = arith.constant 0 : i32
    %c0_i32_1 = arith.constant 0 : i32
    return %c0_i32, %c0_i32_0 : i32, i32
  }
  func.func @transform_6(%arg0: i32) -> (i32, i32) {
    %c0_i32 = arith.constant 0 : i32
    %c0_i32_0 = arith.constant 0 : i32
    %c0_i32_1 = arith.constant 0 : i32
    return %c0_i32, %c0_i32_0 : i32, i32
  }
  func.func @transform_7(%arg0: i32) -> (i32, i32) {
    %c0_i32 = arith.constant 0 : i32
    %c0_i32_0 = arith.constant 0 : i32
    %c0_i32_1 = arith.constant 0 : i32
    return %c0_i32, %c0_i32_0 : i32, i32
  }
  func.func @transform_8(%arg0: i32) -> (i32, i32) {
    %c0_i32 = arith.constant 0 : i32
    %c0_i32_0 = arith.constant 0 : i32
    %c0_i32_1 = arith.constant 0 : i32
    return %c0_i32, %c0_i32_0 : i32, i32
  }
  func.func @transform_9(%arg0: i32) -> (i32, i32) {
    %c0_i32 = arith.constant 0 : i32
    %c0_i32_0 = arith.constant 0 : i32
    %c0_i32_1 = arith.constant 0 : i32
    return %c0_i32, %c0_i32_0 : i32, i32
  }
  func.func @transform_10(%arg0: i32) -> (i32, i32) {
    %c0_i32 = arith.constant 0 : i32
    %c0_i32_0 = arith.constant 0 : i32
    %c0_i32_1 = arith.constant 0 : i32
    return %c0_i32, %c0_i32_0 : i32, i32
  }
  func.func @transform_11(%arg0: i32) -> (i32, i32) {
    %c0_i32 = arith.constant 0 : i32
    %c0_i32_0 = arith.constant 0 : i32
    %c0_i32_1 = arith.constant 0 : i32
    return %c0_i32, %c0_i32_0 : i32, i32
  }
  func.func @transform_12(%arg0: i32) -> (i32, i32) {
    %c0_i32 = arith.constant 0 : i32
    %c0_i32_0 = arith.constant 0 : i32
    %c0_i32_1 = arith.constant 0 : i32
    return %c0_i32, %c0_i32_0 : i32, i32
  }
  func.func @transform_13(%arg0: i32) -> (i32, i32) {
    %c0_i32 = arith.constant 0 : i32
    %c0_i32_0 = arith.constant 0 : i32
    %c0_i32_1 = arith.constant 0 : i32
    return %c0_i32, %c0_i32_0 : i32, i32
  }
  func.func @transform_14(%arg0: i32) -> (i32, i32) {
    %c0_i32 = arith.constant 0 : i32
    %c0_i32_0 = arith.constant 0 : i32
    %c0_i32_1 = arith.constant 0 : i32
    return %c0_i32, %c0_i32_0 : i32, i32
  }
  func.func @transform_15(%arg0: i32) -> (i32, i32) {
    %c0_i32 = arith.constant 0 : i32
    %c0_i32_0 = arith.constant 0 : i32
    %c0_i32_1 = arith.constant 0 : i32
    return %c0_i32, %c0_i32_0 : i32, i32
  }
  func.func @transform_16(%arg0: i32) -> (i32, i32) {
    %c0_i32 = arith.constant 0 : i32
    %c0_i32_0 = arith.constant 0 : i32
    %c0_i32_1 = arith.constant 0 : i32
    return %c0_i32, %c0_i32_0 : i32, i32
  }
  func.func @transform_17(%arg0: i32) -> (i32, i32) {
    %c0_i32 = arith.constant 0 : i32
    %c0_i32_0 = arith.constant 0 : i32
    %c0_i32_1 = arith.constant 0 : i32
    return %c0_i32, %c0_i32_0 : i32, i32
  }
  func.func @transform_18(%arg0: i32) -> (i32, i32) {
    %c0_i32 = arith.constant 0 : i32
    %c0_i32_0 = arith.constant 0 : i32
    return %c0_i32, %arg0 : i32, i32
  }
  func.func @transform_19(%arg0: i32) -> (i32, i32) {
    %c0_i32 = arith.constant 0 : i32
    %c0_i32_0 = arith.constant 0 : i32
    return %c0_i32, %arg0 : i32, i32
  }
  func.func @transform_20(%arg0: i32) -> (i32, i32) {
    %c0_i32 = arith.constant 0 : i32
    %c0_i32_0 = arith.constant 0 : i32
    return %c0_i32, %arg0 : i32, i32
  }
}

</mosaic_0001>

<bundles_post_ra>
// kernel: dens_tmnet_forward.5
= control target key start
LH: loop header
LB: loop body
LE: loop exit
PB: predicated region body
PF: predicated region fallthrough
CT: control target
= control target key end

     0   :  { %s1020_s30 = smov 0   ;;  %s1170_s0 = inlined_call_operand.vmem [shape: f32[3,256], index: 0, kind: input, shape index: {}]   ;;  %s1171_s1 = inlined_call_operand.vmem [shape: f32[2,64,1], index: 1, kind: input, shape index: {}]   ;;  %s1172_s2 = inlined_call_operand.vmem [shape: f32[64,3], index: 2, kind: input, shape index: {}]   ;;  %s1173_s3 = inlined_call_operand.vmem [shape: bf16[32,64], index: 3, kind: input, shape index: {}]   ;;  %s1174_s4 = inlined_call_operand.vmem [shape: f32[32,1], index: 4, kind: input, shape index: {}]   ;;  %s1175_s5 = inlined_call_operand.vmem [shape: bf16[16,32], index: 5, kind: input, shape index: {}]   ;;  %s1176_s6 = inlined_call_operand.vmem [shape: f32[16,1], index: 6, kind: input, shape index: {}]   ;;  %s1177_s7 = inlined_call_operand.vmem [shape: bf16[3,16], index: 7, kind: input, shape index: {}]   ;;  %s1178_s8 = inlined_call_operand.vmem [shape: f32[3,1], index: 8, kind: input, shape index: {}]   ;;  %s1179_s9 = inlined_call_operand.vmem [shape: f32[3,256], index: 9, kind: output, shape index: {}]  }
   0x1 LB: > { %s868_s10 = sadd.s32 4294967295, %s963_s30   ;;  %p872_p0 = scmp.ge.s32.totalorder %s963_s30, 1  ;;  %s963_s30 = sphi %s1020_s30, %s19_s30  }
   0x2   : > { %p296_p1 = scmp.lt.s32.totalorder %s963_s30, 3 }
   0x4   : > { %p297_p2 = pnand %p872_p0, %p296_p1 }
   0x5   : > { %v358_v0 = vld [vmem:[%s1172_s2] sm:$0xff] (!%p297_p2)  ;;  %v965_v1 = vmov (!%p297_p2), 2   ;;  %v966_v2 = vmov (!%p297_p2), 1   ;;  %v360_v3 = vld [vmem:[%s1172_s2 + $0x10] sm:$0xff] (!%p297_p2)  ;;  %v359_v4 = vld [vmem:[%s1172_s2 + $0x8] sm:$0xff] (!%p297_p2)  ;;  %v967_v7 = vmov (!%p297_p2), 0   ;;  %v420_v33 = vlaneseq (!%p297_p2) }
   0x6   : > { %300 = sbr.rel (%p297_p2) target bundleno = 911 (0x38f), region = 56  ;;  %938 = vset.pattern.permute.xlu0 (!%p297_p2), %v965_v1  ;;  %937 = vset.pattern.permute.xlu1 (!%p297_p2), %v966_v2  ;;  %v363_v5 = vld [vmem:[%s1172_s2 + $0x28] sm:$0xff] (!%p297_p2)  ;;  %v362_v6 = vld [vmem:[%s1172_s2 + $0x20] sm:$0xff] (!%p297_p2)  ;;  %v365_v8 = vld [vmem:[%s1172_s2 + $0x38] sm:$0xff] (!%p297_p2)  ;;  %p335_p3 = scmp.lt.s32.totalorder (!%p297_p2), %s868_s10, 1  ;;  %vm626_vm0 = vcmask (!%p297_p2), 523264  }
   0x7   : > { %485 = vperm.xlu0 (!%p297_p2), %938, %v358_v0   ;;  %433 = vperm.xlu1 (!%p297_p2), %937, %v358_v0   ;;  %v361_v9 = vld [vmem:[%s1172_s2 + $0x18] sm:$0xff] (!%p297_p2)  ;;  %v364_v12 = vld [vmem:[%s1172_s2 + $0x30] sm:$0xff] (!%p297_p2)  ;;  %v371_v15 = vld [vmem:[%s1174_s4 + $0x8] sm:$0xff] (!%p297_p2)  ;;  %v421_v35 = vshrl.u32 (!%p297_p2), %v420_v33, 7  ;;  %vm969_vm1 = vmmov (!%p297_p2), 0   ;;  %vm703_vm2 = vcmask (!%p297_p2), 261120  }
   0x8   : > { %v373_v16 = vld [vmem:[%s1174_s4 + $0x18] sm:$0xff] (!%p297_p2)  ;;  %v377_v18 = vld [vmem:[%s1176_s6 + $0x8] sm:$0xff] (!%p297_p2)  ;;  %v370_v22 = vld [vmem:[%s1174_s4] sm:$0xff] (!%p297_p2)  ;;  %vm756_vm3 = vcmask (!%p297_p2), 130048  }
   0x9   : > { %v372_v23 = vld [vmem:[%s1174_s4 + $0x10] sm:$0xff] (!%p297_p2)  ;;  %v952_v24 = vld [vmem:[%s1173_s3] sm:$0xff] (!%p297_p2)   ;;  %v422_v38 = vsub.s32 (!%p297_p2), 0, %v421_v35  ;;  %v466_v39 = vsub.s32 (!%p297_p2), 1, %v421_v35  ;;  %v518_v42 = vsub.s32 (!%p297_p2), 2, %v421_v35 }
   0xa   : > { %v376_v25 = vld [vmem:[%s1176_s6] sm:$0xff] (!%p297_p2)  ;;  %906 = vmatprep.mubr.msk.bf16.mxu0 (!%p297_p2), %vm626_vm0, %v952_v24 }
   0xb   : > { %493 = vperm.xlu0 (!%p297_p2), %938, %v360_v3   ;;  %437 = vperm.xlu1 (!%p297_p2), %937, %v359_v4   ;;  %v379_v26 = vld [vmem:[%s1178_s8] sm:$0x7] (!%p297_p2) }
   0xd   : > { %s1181_s10 = smov (!%p335_p3, %s868_s10), 1 }
   0xe   : > { %s886_s25 = sshll.u32 %s1181_s10, 6 }
   0xf   : > { %505 = vperm.xlu0 %938, %v363_v5   ;;  %939 = vset.pattern.permute.xlu1 %v965_v1  ;;  %s1062_s28 = scalar_lea.vmem %s1171_s1, %s886_s25 }
  0x10   : > { %489 = vperm.xlu1 %939, %v359_v4   ;;  %v350_v10 = vld [vmem:[%s1062_s28] sm:$0xff]  ;;  %v351_v11 = vld [vmem:[%s1062_s28 + $0x8] sm:$0xff]  ;;  %v357_v14 = vld [vmem:[%s1062_s28 + $0x38] sm:$0xff] }
  0x11   : > { %v354_v13 = vld [vmem:[%s1062_s28 + $0x20] sm:$0xff]  ;;  %v352_v17 = vld [vmem:[%s1062_s28 + $0x10] sm:$0xff]  ;;  %v353_v19 = vld [vmem:[%s1062_s28 + $0x18] sm:$0xff] }
  0x12   : > { %v355_v20 = vld [vmem:[%s1062_s28 + $0x28] sm:$0xff]  ;;  %v356_v21 = vld [vmem:[%s1062_s28 + $0x30] sm:$0xff]  ;;  %s873_s28 = sshll.u32 %s1181_s10, 2 }
  0x13   : > { %946 = vset.pattern.permute.xlu0 %v966_v2  ;;  %s338_s12 = scalar_lea.vmem %s1170_s0, %s873_s28  ;;  %s347_s21 = scalar_lea.vmem %s1179_s9, %s873_s28 }
  0x14   : > { %449 = vperm.xlu0 %946, %v362_v6   ;;  %940 = vset.pattern.permute.xlu1 %v967_v7  ;;  %v1112_v40 = vld [vmem:[%s338_s12] sm:$0x7] }
  0x15   : > { %392 = vperm.xlu1 %940, %v360_v3   ;;  %v1115_v43 = vrot.slane %v1112_v40, %v422_v38  ;;  %v1118_v44 = vrot.slane %v1112_v40, %v466_v39  ;;  %v1122_v48 = vrot.slane %v1112_v40, %v518_v42 }
  0x18   : > { %461 = vperm.xlu0 %946, %v365_v8  }
  0x19   : > { %941 = vset.pattern.permute.xlu1 %v966_v2 }
  0x1a   : > { %441 = vperm.xlu1 %941, %v360_v3  }
  0x1c   : > { %949 = vset.pattern.permute.xlu0 %v967_v7 }
  0x1d   : > { %382 = vperm.xlu0 %949, %v358_v0  }
  0x1e   : > { %445 = vperm.xlu1 %941, %v361_v9  }
  0x21   : > { %387 = vperm.xlu0 %949, %v359_v4  }
  0x22   : > { %942 = vset.pattern.permute.xlu1 %v965_v1 }
  0x23   : > { %497 = vperm.xlu1 %942, %v361_v9  }
  0x25   : > { %397 = vperm.xlu0 %949, %v361_v9  }
  0x27   : > { %943 = vset.pattern.permute.xlu1 %v967_v7 }
  0x28   : > { %538 = vperm.xlu1 %943, %v350_v10  }
  0x29   : > { %543 = vperm.xlu0 %949, %v351_v11  }
  0x2c   : > { %402 = vperm.xlu1 %943, %v362_v6  }
  0x2d   : > { %412 = vperm.xlu0 %949, %v364_v12  }
  0x30   : > { %407 = vperm.xlu1 %943, %v363_v5  }
  0x31   : > { %558 = vperm.xlu0 %949, %v354_v13  }
  0x34   : > { %944 = vset.pattern.permute.xlu1 %v966_v2 }
  0x35   : > { %453 = vperm.xlu1 %944, %v363_v5   ;;  %573 = vperm.xlu0 %949, %v357_v14  }
  0x39   : > { %945 = vset.pattern.permute.xlu1 %v965_v1  ;;  %603 = vperm.xlu0 %949, %v371_v15  }
  0x3a   : > { %501 = vperm.xlu1 %945, %v362_v6  }
  0x3d   : > { %613 = vperm.xlu0 %949, %v373_v16  }
  0x3e   : > { %947 = vset.pattern.permute.xlu1 %v967_v7 }
  0x3f   : > { %548 = vperm.xlu1 %947, %v352_v17  }
  0x41   : > { %695 = vperm.xlu0 %949, %v377_v18  }
  0x43   : > { %553 = vperm.xlu1 %947, %v353_v19  }
  0x47   : > { %417 = vperm.xlu1 %947, %v365_v8  }
  0x4b   : > { %948 = vset.pattern.permute.xlu1 %v966_v2 }
  0x4c   : > { %457 = vperm.xlu1 %948, %v364_v12  }
  0x50   : > { %950 = vset.pattern.permute.xlu1 %v965_v1 }
  0x51   : > { %509 = vperm.xlu1 %950, %v364_v12  }
  0x55   : > { %513 = vperm.xlu1 %950, %v365_v8  }
  0x59   : > { %951 = vset.pattern.permute.xlu1 %v967_v7 }
  0x5a   : > { %563 = vperm.xlu1 %951, %v355_v20  }
  0x5e   : > { %568 = vperm.xlu1 %951, %v356_v21  }
  0x62   : > { %598 = vperm.xlu1 %951, %v370_v22  }
  0x66   : > { %608 = vperm.xlu1 %951, %v372_v23  }
  0x6a   : > { %690 = vperm.xlu1 %951, %v376_v25  }
  0x6e   : > { %753 = vperm.xlu1 %951, %v379_v26  }
  0x86   : > { %v434_v27 = vpop.permute.xlu1 %433  ;;  %v486_v28 = vpop.permute.xlu0 %485 }
  0x87   : > { %v468_v49 = vmul.f32 %v1118_v44, %v434_v27  ;;  %v520_v53 = vmul.f32 %v1122_v48, %v486_v28 }
  0x8a   : > { %v438_v29 = vpop.permute.xlu1 %437  ;;  %v494_v30 = vpop.permute.xlu0 %493 }
  0x8b   : > { %v469_v51 = vmul.f32 %v1118_v44, %v438_v29  ;;  %v522_v11 = vmul.f32 %v1122_v48, %v494_v30 }
  0x8e   : > { %v1102_v31 = vpop.permute.xlu0 %505 }
  0x8f   : > { %v490_v32 = vpop.permute.xlu1 %489 }
  0x90   : > { %v521_v58 = vmul.f32 %v1122_v48, %v490_v32 }
  0x93   : > { %v450_v34 = vpop.permute.xlu0 %449 }
  0x94   : > { %v393_v36 = vpop.permute.xlu1 %392  ;;  %v472_v27 = vmul.f32 %v1118_v44, %v450_v34 }
  0x95   : > { %v426_v8 = vmul.f32 %v1115_v43, %v393_v36 }
  0x97   : > { %v1110_v37 = vpop.permute.xlu0 %461 }
  0x98   : > { %v475_v39 = vmul.f32 %v1118_v44, %v1110_v37 }
  0x99   : > { %v442_v41 = vpop.permute.xlu1 %441 }
  0x9a   : > { %v470_v7 = vmul.f32 %v1118_v44, %v442_v41 }
  0x9c   : > { %v383_v45 = vpop.permute.xlu0 %382  ;;  %v478_v12 = vadd.f32 %v470_v7, %v426_v8 }
  0x9d   : > { %v446_v46 = vpop.permute.xlu1 %445  ;;  %v424_v47 = vmul.f32 %v1115_v43, %v383_v45 }
  0x9e   : > { %v471_v13 = vmul.f32 %v1118_v44, %v446_v46  ;;  %v530_v17 = vadd.f32 %v522_v11, %v478_v12 }
  0x9f   : > { %v476_v54 = vadd.f32 %v468_v49, %v424_v47  ;;  %v525_v47 = vmul.f32 %v1122_v48, %v1102_v31 }
  0xa0   : > { %v388_v50 = vpop.permute.xlu0 %387 }
  0xa1   : > { %v425_v52 = vmul.f32 %v1115_v43, %v388_v50  ;;  %v528_v59 = vadd.f32 %v520_v53, %v476_v54 }
  0xa2   : > { %v498_v55 = vpop.permute.xlu1 %497 }
  0xa3   : > { %v477_v56 = vadd.f32 %v469_v51, %v425_v52  ;;  %v523_v16 = vmul.f32 %v1122_v48, %v498_v55 }
  0xa4   : > { %v398_v57 = vpop.permute.xlu0 %397 }
  0xa5   : > { %v529_v61 = vadd.f32 %v521_v58, %v477_v56  ;;  %v427_v9 = vmul.f32 %v1115_v43, %v398_v57 }
  0xa7   : > { %v539_v60 = vpop.permute.xlu1 %538  ;;  %v479_v14 = vadd.f32 %v471_v13, %v427_v9 }
  0xa8   : > { %v576_v62 = vadd.f32 %v539_v60, %v528_v59  ;;  %v544_v63 = vpop.permute.xlu0 %543 }
  0xa9   : > { %v577_v0 = vadd.f32 %v544_v63, %v529_v61  ;;  %v531_v19 = vadd.f32 %v523_v16, %v479_v14 }
  0xaa   : > { %v584_v1 = vmax.f32 %v576_v62, 0.0 }
  0xab   : > { %v585_v2 = vmax.f32 %v577_v0, 0.0  ;;  %v403_v3 = vpop.permute.xlu1 %402 }
  0xac   : > { %v428_v28 = vmul.f32 %v1115_v43, %v403_v3  ;;  %v413_v29 = vpop.permute.xlu0 %412 }
  0xad   : > { %v592_v4 = vpack.c.bf16 %v585_v2, %v584_v1  ;;  %v430_v51 = vmul.f32 %v1115_v43, %v413_v29  ;;  %v968_v2 = vmov 0.0  }
  0xae   : > { %v480_v35 = vadd.f32 %v472_v27, %v428_v28  ;;  %910 = vmatprep.subr.bf16.mxu1 %v968_v2  ;;  %914 = vmatprep.mubr.msk.bf16.mxu1 %vm969_vm1, %v968_v2 }
  0xaf   : > { %v408_v5 = vpop.permute.xlu1 %407  ;;  %898 = vmatprep.subr.bf16.mxu0 %v592_v4 }
  0xb0   : > { %899 = vmatpush3.bf16.msra.mxu0 %v592_v4  ;;  %v429_v36 = vmul.f32 %v1115_v43, %v408_v5  ;;  %v559_v34 = vpop.permute.xlu0 %558 }
  0xb4   : > { %v454_v6 = vpop.permute.xlu1 %453  ;;  %v574_v58 = vpop.permute.xlu0 %573 }
  0xb5   : > { %v473_v30 = vmul.f32 %v1118_v44, %v454_v6 }
  0xb7   : > { %v481_v41 = vadd.f32 %v473_v30, %v429_v36 }
  0xb8   : > { %v604_v4 = vpop.permute.xlu0 %603 }
  0xb9   : > { %v502_v10 = vpop.permute.xlu1 %501  ;;  %v533_v55 = vadd.f32 %v525_v47, %v481_v41 }
  0xba   : > { %v524_v32 = vmul.f32 %v1122_v48, %v502_v10 }
  0xbc   : > { %v532_v42 = vadd.f32 %v524_v32, %v480_v35  ;;  %v614_v9 = vpop.permute.xlu0 %613  ;;  %v378_v35 = vld [vmem:[%s1177_s7] sm:$0x3] }
  0xbe   : > { %v549_v15 = vpop.permute.xlu1 %548  ;;  %v580_v52 = vadd.f32 %v559_v34, %v532_v42 }
  0xbf   : > { %v578_v18 = vadd.f32 %v549_v15, %v530_v17 }
  0xc0   : > { %v588_v60 = vmax.f32 %v580_v52, 0.0 }
  0xc1   : > { %v586_v22 = vmax.f32 %v578_v18, 0.0 }
  0xc2   : > { %v554_v20 = vpop.permute.xlu1 %553 }
  0xc3   : > { %v579_v21 = vadd.f32 %v554_v20, %v531_v19 }
  0xc5   : > { %v587_v23 = vmax.f32 %v579_v21, 0.0  ;;  %v954_v21 = vld [vmem:[%s1175_s5] sm:$0xff]  }
  0xc6   : > { %v418_v24 = vpop.permute.xlu1 %417 }
  0xc7   : > { %v593_v25 = vpack.c.bf16 %v587_v23, %v586_v22  ;;  %v431_v38 = vmul.f32 %v1115_v43, %v418_v24 }
  0xc9   : > { %900 = vmatprep.subr.bf16.mxu0 %v593_v25  ;;  %v483_v49 = vadd.f32 %v475_v39, %v431_v38 }
  0xca   : > { %901 = vmatpush3.bf16.msra.mxu0 %v593_v25 }
  0xcb   : > { %v458_v26 = vpop.permute.xlu1 %457 }
  0xcc   : > { %v474_v50 = vmul.f32 %v1118_v44, %v458_v26  ;;  %v696_v26 = vpop.permute.xlu0 %695 }
  0xce   : > { %v482_v56 = vadd.f32 %v474_v50, %v430_v51 }
  0xd0   : > { %v510_v33 = vpop.permute.xlu1 %509 }
  0xd1   : > { %v526_v53 = vmul.f32 %v1122_v48, %v510_v33 }
  0xd3   : > { %v534_v62 = vadd.f32 %v526_v53, %v482_v56 }
  0xd4   : > { %v514_v45 = vpop.permute.xlu1 %513 }
  0xd5   : > { %v527_v46 = vmul.f32 %v1122_v48, %v514_v45  ;;  %v953_v48 = vld [vmem:[%s1173_s3 + $0x8] sm:$0xff]  }
  0xd7   : > { %v535_v54 = vadd.f32 %v527_v46, %v483_v49 }
  0xd9   : > { %v564_v37 = vpop.permute.xlu1 %563  ;;  %v583_v59 = vadd.f32 %v574_v58, %v535_v54 }
  0xda   : > { %v581_v57 = vadd.f32 %v564_v37, %v533_v55 }
  0xdb   : > { %v591_v44 = vmax.f32 %v583_v59, 0.0 }
  0xdc   : > { %v589_v61 = vmax.f32 %v581_v57, 0.0 }
  0xdd   : > { %v569_v63 = vpop.permute.xlu1 %568 }
  0xde   : > { %v594_v31 = vpack.c.bf16 %v589_v61, %v588_v60  ;;  %v582_v0 = vadd.f32 %v569_v63, %v534_v62 }
  0xe0   : > { %v590_v1 = vmax.f32 %v582_v0, 0.0  ;;  %902 = vmatprep.subr.bf16.mxu0 %v594_v31 }
  0xe1   : > { %903 = vmatpush3.bf16.msra.mxu0 %v594_v31  ;;  %v599_v3 = vpop.permute.xlu1 %598 }
  0xe2   : > { %v595_v43 = vpack.c.bf16 %v591_v44, %v590_v1 }
  0xe4   : > { %904 = vmatprep.subr.bf16.mxu0 %v595_v43 }
  0xe5   : > { %905 = vmatpush3.bf16.msra.mxu0 %v595_v43  ;;  %v609_v5 = vpop.permute.xlu1 %608 }
  0xe8   : > { %907 = vmatmul.mubr.msk.bf16.vlgmr.msra.gmra.mrb[0].mxu0 %vm626_vm0, %v953_v48 }
  0xe9   : > { %v691_v22 = vpop.permute.xlu1 %690 }
  0xed   : > { %v754_v36 = vpop.permute.xlu1 %753 }
 0x1bb   : > { %v908_v6 = vpop.f32.mrb[0].mxu0 }
 0x1bc   : > { %v676_v7 = vadd.f32 %v908_v6, %v609_v5  ;;  %v667_v8 = vpop.f32.mrb[1].mxu0 }
 0x1bd   : > { %v668_v10 = vadd.f32 %v667_v8, %v599_v3  ;;  %v909_v11 = vpop.f32.mrb[2].mxu0 }
 0x1be   : > { %v679_v12 = vadd.f32 %v909_v11, %v614_v9  ;;  %v670_v13 = vpop.f32.mrb[3].mxu0  ;;  %v684_v15 = vmax.f32 %v676_v7, 0.0 }
 0x1bf   : > { %v671_v14 = vadd.f32 %v670_v13, %v604_v4  ;;  %v682_v17 = vmax.f32 %v668_v10, 0.0 }
 0x1c0   : > { %v685_v16 = vmax.f32 %v679_v12, 0.0 }
 0x1c1   : > { %v683_v18 = vmax.f32 %v671_v14, 0.0 }
 0x1c2   : > { %v687_v19 = vpack.c.bf16 %v685_v16, %v684_v15 }
 0x1c3   : > { %v686_v20 = vpack.c.bf16 %v683_v18, %v682_v17 }
 0x1c5   : > { %911 = vmatpush3.bf16.msra.mxu1 %v686_v20 }
 0x1c6   : > { %912 = vmatprep.subr.bf16.mxu1 %v968_v2 }
 0x1c9   : > { %913 = vmatpush3.bf16.msra.mxu1 %v687_v19 }
 0x1ca   : > { %918 = vmatprep.subr.bf16.mxu1 %v968_v2 }
 0x1cc   : > { %915 = vmatmul.mubr.msk.bf16.vlgmr.msra.gmra.mrb[0].mxu1 %vm703_vm2, %v954_v21 }
 0x1cd   : > { %920 = vmatprep.mubr.msk.bf16.mxu1 %vm969_vm1, %v968_v2 }
 0x29f   : > { %v741_v23 = vpop.f32.mrb[0].mxu1 }
 0x2a0   : > { %v742_v24 = vadd.f32 %v741_v23, %v691_v22  ;;  %v916_v25 = vpop.f32.mrb[1].mxu1 }
 0x2a1   : > { %v744_v27 = vpop.f32.mrb[2].mxu1 }
 0x2a2   : > { %v745_v28 = vadd.f32 %v744_v27, %v696_v26  ;;  %v917_v29 = vpop.f32.mrb[3].mxu1  ;;  %v748_v30 = vmax.f32 %v742_v24, 0.0 }
 0x2a4   : > { %v749_v32 = vmax.f32 %v745_v28, 0.0 }
 0x2a6   : > { %v750_v33 = vpack.c.bf16 %v749_v32, %v748_v30 }
 0x2a8   : > { %919 = vmatpush3.bf16.msra.mxu1 %v750_v33 }
 0x2ab   : > { %921 = vmatmul.mubr.msk.bf16.vlgmr.msra.gmra.mrb[4].mxu1 %vm756_vm3, %v378_v35 }
 0x37e   : > { %v794_v38 = vpop.f32.mrb[4].mxu1 }
 0x37f   : > { %v795_v39 = vadd.f32 %v794_v38, %v754_v36  ;;  %v922_v41 = vpop.f32.mrb[5].mxu1 }
 0x380   : > { %v797_v42 = vpop.f32.mrb[6].mxu1 }
 0x381   : > { %955 = vtanh.f32 %v795_v39  ;;  %v923_v45 = vpop.f32.mrb[7].mxu1 }
 0x38b   : > { %v956_v34 = vpop.eup %955 }
 0x38c   : > { %v801_v46 = vadd.f32 %v956_v34, %v1112_v40 }
 0x38e   : > { %802 = vst [vmem:[%s347_s21] sm:$0x7] %v801_v46 }
 0x38f PF: > { %s19_s30 = sadd.s32 1, %s963_s30  }
 0x390   : > { %p16_p4 = scmp.ge.s32.totalorder %s19_s30, 4  }
 0x392   :  { %18 = sbr.rel (!%p16_p4) target bundleno = 1 (0x1), region = 89 }

// kernel: dens_tmnet_forward.3
= control target key start
LH: loop header
LB: loop body
LE: loop exit
PB: predicated region body
PF: predicated region fallthrough
CT: control target
= control target key end

     0   :  { %10 = vsyncpa [#allocation3], 0  ;;  %s939_s18 = smov [#allocation2]   ;;  %s1028_s0 = inlined_call_operand.vmem [shape: bf16[8,768], index: 0, kind: input, shape index: {}]   ;;  %s1029_s1 = inlined_call_operand.hbm [shape: bf16[768,128], index: 1, kind: input, shape index: {}]   ;;  %s1030_s2 = inlined_call_operand.vmem [shape: f32[1,128], index: 2, kind: input, shape index: {}]   ;;  %s1031_s3 = inlined_call_operand.vmem [shape: bf16[128,128], index: 3, kind: input, shape index: {}]   ;;  %s1032_s4 = inlined_call_operand.vmem [shape: f32[1,128], index: 4, kind: input, shape index: {}]   ;;  %s1033_s5 = inlined_call_operand.vmem [shape: f32[8,128], index: 5, kind: output, shape index: {}]  }
   0x1   :  { %s18_s19 = sshll.u32 %s939_s18, 4  ;;  %s915_s22 = scalar_lea.hbm %s1029_s1, 6144  ;;  %s19_s19 = int_to_ptr.vmem [resolvable:$true] %s18_s19 }
   0x2   :  { %p916_p0 = scmp.ne.s32.totalorder %s1029_s1, %s915_s22  ;;  %p919_p1 = scmp.lt.u32.totalorder %s915_s22, %s1029_s1 }
   0x4   :  { %p921_p2 = pnand %p919_p1, %p916_p0 }
   0x6   :  { %924 = shalt.err (!%p921_p2)
}
   0x7   :  { %s925_s27 = scalar_lea.vmem %s19_s19, 6144  ;;  %p930_p4 = scmp.lt.s32.totalorder %s19_s19, %s19_s19 }
   0x8   :  { %p926_p3 = scmp.ne.s32.totalorder %s19_s19, %s925_s27  ;;  %p931_p5 = scmp.lt.s32.totalorder %s925_s27, %s925_s27 }
   0xa   :  { %p932_p6 = por %p931_p5, %p930_p4 }
   0xc   :  { %p933_p7 = pnand %p932_p6, %p926_p3 }
   0xe   :  { %936 = shalt.err (!%p933_p7)
}
   0xf   :  { %s940_s28 = smov 64   ;;  %s941_s29 = smov 4  }
  0x10   :  { %24 = dma.hbm_to_vmem [thread:$0]  %s1029_s1, 6144, %s19_s19, [#allocation3], %s940_s28, %s940_s28, %s941_s29  }
  0x11   :  { %937 = dma.done.wait [#allocation3], 6144  }
  0x12   :  { %938 = vsyncadd [#allocation3], 4294961152  ;;  %v853_v0 = vld [vmem:[#allocation2 + $0x40] sm:$0xff]   ;;  %v857_v4 = vld [vmem:[#allocation2 + $0x48] sm:$0xff]   ;;  %v942_v58 = vmov 0.0   ;;  %vm943_vm0 = vmmov 0  }
  0x13   :  { %v854_v1 = vld [vmem:[#allocation2] sm:$0xff]   ;;  %753 = vmatprep.subr.bf16.mxu0 %v853_v0  ;;  %v858_v5 = vld [vmem:[#allocation2 + $0x8] sm:$0xff]   ;;  %v861_v8 = vld [vmem:[#allocation2 + $0x50] sm:$0xff]  }
  0x14   :  { %v855_v2 = vld [vmem:[#allocation2 + $0xc0] sm:$0xff]   ;;  %754 = vmatpush3.bf16.msra.mxu0 %v854_v1  ;;  %v859_v6 = vld [vmem:[#allocation2 + $0xc8] sm:$0xff]   ;;  %v862_v9 = vld [vmem:[#allocation2 + $0x10] sm:$0xff]  }
  0x15   :  { %v856_v3 = vld [vmem:[#allocation2 + $0x80] sm:$0xff]   ;;  %775 = vmatprep.subr.bf16.mxu1 %v855_v2  ;;  %755 = vmatprep.subr.bf16.mxu0 %v857_v4  ;;  %v860_v7 = vld [vmem:[#allocation2 + $0x88] sm:$0xff]   ;;  %v863_v10 = vld [vmem:[#allocation2 + $0xd0] sm:$0xff]  }
  0x16   :  { %776 = vmatpush3.bf16.msra.mxu1 %v856_v3  ;;  %v864_v11 = vld [vmem:[#allocation2 + $0x90] sm:$0xff]   ;;  %v865_v12 = vld [vmem:[#allocation2 + $0x58] sm:$0xff]   ;;  %v869_v16 = vld [vmem:[#allocation2 + $0x60] sm:$0xff]  }
  0x17   :  { %777 = vmatprep.subr.bf16.mxu1 %v859_v6  ;;  %v866_v13 = vld [vmem:[#allocation2 + $0x18] sm:$0xff]   ;;  %v870_v17 = vld [vmem:[#allocation2 + $0x20] sm:$0xff]   ;;  %v873_v20 = vld [vmem:[#allocation2 + $0x68] sm:$0xff]  }
  0x18   :  { %756 = vmatpush3.bf16.msra.mxu0 %v858_v5  ;;  %v867_v14 = vld [vmem:[#allocation2 + $0xd8] sm:$0xff]   ;;  %v871_v18 = vld [vmem:[#allocation2 + $0xe0] sm:$0xff]   ;;  %v874_v21 = vld [vmem:[#allocation2 + $0x28] sm:$0xff]  }
  0x19   :  { %757 = vmatprep.subr.bf16.mxu0 %v861_v8  ;;  %v868_v15 = vld [vmem:[#allocation2 + $0x98] sm:$0xff]   ;;  %v872_v19 = vld [vmem:[#allocation2 + $0xa0] sm:$0xff]   ;;  %v875_v22 = vld [vmem:[#allocation2 + $0xe8] sm:$0xff]  }
  0x1a   :  { %778 = vmatpush3.bf16.msra.mxu1 %v860_v7  ;;  %v876_v23 = vld [vmem:[#allocation2 + $0xa8] sm:$0xff]   ;;  %v877_v24 = vld [vmem:[#allocation2 + $0x70] sm:$0xff]   ;;  %v881_v28 = vld [vmem:[#allocation2 + $0x78] sm:$0xff]  }
  0x1b   :  { %779 = vmatprep.subr.bf16.mxu1 %v863_v10  ;;  %v878_v25 = vld [vmem:[#allocation2 + $0x30] sm:$0xff]   ;;  %v882_v29 = vld [vmem:[#allocation2 + $0x38] sm:$0xff]   ;;  %v35_v31 = vld [vmem:[%s1028_s0] sm:$0xff] }
  0x1c   :  { %758 = vmatpush3.bf16.msra.mxu0 %v862_v9  ;;  %v879_v26 = vld [vmem:[#allocation2 + $0xf0] sm:$0xff]   ;;  %v883_v30 = vld [vmem:[#allocation2 + $0xf8] sm:$0xff]   ;;  %v690_v32 = vcombine.low %v35_v31, %v35_v31  ;;  %v691_v33 = vcombine.high %v35_v31, %v35_v31  ;;  %v887_v35 = vld [vmem:[#allocation2 + $0x140] sm:$0xff]  }
  0x1d   :  { %759 = vmatprep.subr.bf16.mxu0 %v865_v12  ;;  %v880_v27 = vld [vmem:[#allocation2 + $0xb0] sm:$0xff]   ;;  %v886_v34 = vld [vmem:[#allocation2 + $0xb8] sm:$0xff]   ;;  %v36_v36 = vld [vmem:[%s1028_s0 + $0x8] sm:$0xff] }
  0x1e   :  { %780 = vmatpush3.bf16.msra.mxu1 %v864_v11  ;;  %482 = vmatprep.mubr.bf16.mxu0 %v691_v33  ;;  %v692_v37 = vcombine.low %v36_v36, %v36_v36  ;;  %v693_v38 = vcombine.high %v36_v36, %v36_v36  ;;  %v890_v39 = vld [vmem:[#allocation2 + $0x100] sm:$0xff]   ;;  %v891_v40 = vld [vmem:[#allocation2 + $0x148] sm:$0xff]   ;;  %v893_v42 = vld [vmem:[#allocation2 + $0x150] sm:$0xff]  }
  0x1f   :  { %781 = vmatprep.subr.bf16.mxu1 %v867_v14  ;;  %v892_v41 = vld [vmem:[#allocation2 + $0x108] sm:$0xff]   ;;  %v894_v43 = vld [vmem:[#allocation2 + $0x110] sm:$0xff]   ;;  %v895_v44 = vld [vmem:[#allocation2 + $0x158] sm:$0xff]  }
  0x20   :  { %760 = vmatpush3.bf16.msra.mxu0 %v866_v13  ;;  %522 = vmatprep.mubr.bf16.mxu1 %v693_v38  ;;  %v896_v45 = vld [vmem:[#allocation2 + $0x118] sm:$0xff]   ;;  %v897_v46 = vld [vmem:[#allocation2 + $0x160] sm:$0xff]   ;;  %v899_v48 = vld [vmem:[#allocation2 + $0x168] sm:$0xff]  }
  0x21   :  { %761 = vmatprep.subr.bf16.mxu0 %v869_v16  ;;  %v898_v47 = vld [vmem:[#allocation2 + $0x120] sm:$0xff]   ;;  %v37_v49 = vld [vmem:[%s1028_s0 + $0x10] sm:$0xff]  ;;  %v900_v51 = vld [vmem:[#allocation2 + $0x128] sm:$0xff]  }
  0x22   :  { %782 = vmatpush3.bf16.msra.mxu1 %v868_v15  ;;  %v695_v50 = vcombine.high %v37_v49, %v37_v49  ;;  %v901_v52 = vld [vmem:[#allocation2 + $0x170] sm:$0xff]   ;;  %v903_v54 = vld [vmem:[#allocation2 + $0x178] sm:$0xff]   ;;  %v694_v56 = vcombine.low %v37_v49, %v37_v49  ;;  %v907_v57 = vld [vmem:[%s1031_s3] sm:$0xff]  }
  0x23   :  { %783 = vmatprep.subr.bf16.mxu1 %v871_v18  ;;  %v902_v53 = vld [vmem:[#allocation2 + $0x130] sm:$0xff]   ;;  %v904_v55 = vld [vmem:[#allocation2 + $0x138] sm:$0xff]   ;;  %v908_v59 = vld [vmem:[%s1031_s3 + $0x8] sm:$0xff]  }
  0x24   :  { %762 = vmatpush3.bf16.msra.mxu0 %v870_v17  ;;  %v909_v60 = vld [vmem:[%s1031_s3 + $0x10] sm:$0xff]   ;;  %v910_v61 = vld [vmem:[%s1031_s3 + $0x18] sm:$0xff]   ;;  %v911_v62 = vld [vmem:[%s1031_s3 + $0x20] sm:$0xff]  }
  0x25   :  { %763 = vmatprep.subr.bf16.mxu0 %v873_v20  ;;  %v912_v63 = vld [vmem:[%s1031_s3 + $0x28] sm:$0xff]   ;;  %v913_v0 = vld [vmem:[%s1031_s3 + $0x30] sm:$0xff]   ;;  %v914_v1 = vld [vmem:[%s1031_s3 + $0x38] sm:$0xff]  }
  0x26   :  { %784 = vmatpush3.bf16.msra.mxu1 %v872_v19  ;;  %v689_v3 = vld [vmem:[%s1030_s2] ss:$0 sm:$0xff] }
  0x27   :  { %785 = vmatprep.subr.bf16.mxu1 %v875_v22 }
  0x28   :  { %764 = vmatpush3.bf16.msra.mxu0 %v874_v21 }
  0x29   :  { %765 = vmatprep.subr.bf16.mxu0 %v877_v24 }
  0x2a   :  { %786 = vmatpush3.bf16.msra.mxu1 %v876_v23  ;;  %v744_v23 = vld [vmem:[%s1032_s4] ss:$0 sm:$0xff] }
  0x2b   :  { %787 = vmatprep.subr.bf16.mxu1 %v879_v26 }
  0x2c   :  { %766 = vmatpush3.bf16.msra.mxu0 %v878_v25 }
  0x2d   :  { %767 = vmatprep.subr.bf16.mxu0 %v881_v28 }
  0x2e   :  { %788 = vmatpush3.bf16.msra.mxu1 %v880_v27 }
  0x2f   :  { %789 = vmatprep.subr.bf16.mxu1 %v883_v30 }
  0x30   :  { %768 = vmatpush3.bf16.msra.mxu0 %v882_v29 }
  0x31   :  { %797 = vmatprep.subr.bf16.mxu0 %v887_v35 }
  0x32   :  { %790 = vmatpush3.bf16.msra.mxu1 %v886_v34 }
  0x33   :  { %483 = vmatmul.mubr.bf16.vlgmr.msra.gmra.mrb[0].mxu0 %v690_v32  ;;  %828 = vmatprep.subr.bf16.mxu1 %v942_v58 }
  0x34   :  { %798 = vmatpush3.bf16.msra.mxu0 %v890_v39  ;;  %562 = vmatprep.mubr.bf16.mxu0 %v695_v50 }
  0x35   :  { %523 = vmatmul.mubr.bf16.vlgmr.msra.gmra.mrb[0].mxu1 %v692_v37  ;;  %799 = vmatprep.subr.bf16.mxu0 %v891_v40 }
  0x36   :  { %829 = vmatpush3.bf16.msra.mxu1 %v907_v57  ;;  %844 = vmatprep.mubr.msk.bf16.mxu1 %vm943_vm0, %v942_v58 }
  0x37   :  { %830 = vmatprep.subr.bf16.mxu1 %v942_v58 }
  0x38   :  { %800 = vmatpush3.bf16.msra.mxu0 %v892_v41 }
  0x39   :  { %801 = vmatprep.subr.bf16.mxu0 %v893_v42 }
  0x3a   :  { %831 = vmatpush3.bf16.msra.mxu1 %v908_v59 }
  0x3b   :  { %832 = vmatprep.subr.bf16.mxu1 %v942_v58 }
  0x3c   :  { %802 = vmatpush3.bf16.msra.mxu0 %v894_v43 }
  0x3d   :  { %803 = vmatprep.subr.bf16.mxu0 %v895_v44 }
  0x3e   :  { %833 = vmatpush3.bf16.msra.mxu1 %v909_v60 }
  0x3f   :  { %834 = vmatprep.subr.bf16.mxu1 %v942_v58 }
  0x40   :  { %804 = vmatpush3.bf16.msra.mxu0 %v896_v45 }
  0x41   :  { %805 = vmatprep.subr.bf16.mxu0 %v897_v46 }
  0x42   :  { %835 = vmatpush3.bf16.msra.mxu1 %v910_v61 }
  0x43   :  { %836 = vmatprep.subr.bf16.mxu1 %v942_v58 }
  0x44   :  { %806 = vmatpush3.bf16.msra.mxu0 %v898_v47 }
  0x45   :  { %807 = vmatprep.subr.bf16.mxu0 %v899_v48 }
  0x46   :  { %837 = vmatpush3.bf16.msra.mxu1 %v911_v62 }
  0x47   :  { %838 = vmatprep.subr.bf16.mxu1 %v942_v58 }
  0x48   :  { %808 = vmatpush3.bf16.msra.mxu0 %v900_v51 }
  0x49   :  { %809 = vmatprep.subr.bf16.mxu0 %v901_v52 }
  0x4a   :  { %839 = vmatpush3.bf16.msra.mxu1 %v912_v63 }
  0x4b   :  { %840 = vmatprep.subr.bf16.mxu1 %v942_v58 }
  0x4c   :  { %810 = vmatpush3.bf16.msra.mxu0 %v902_v53 }
  0x4d   :  { %811 = vmatprep.subr.bf16.mxu0 %v903_v54 }
  0x4e   :  { %841 = vmatpush3.bf16.msra.mxu1 %v913_v0 }
  0x4f   :  { %842 = vmatprep.subr.bf16.mxu1 %v942_v58 }
  0x50   :  { %812 = vmatpush3.bf16.msra.mxu0 %v904_v55 }
  0x52   :  { %843 = vmatpush3.bf16.msra.mxu1 %v914_v1 }
  0x53   :  { %563 = vmatmul.mubr.bf16.vlgmr.msra.gmra.mrb[4].mxu0 %v694_v56 }
 0x106   :  { %v769_v2 = vpop.f32.mrb[0].mxu0 }
 0x107   :  { %v770_v4 = vpop.f32.mrb[1].mxu0 }
 0x108   :  { %v771_v5 = vadd.f32 %v770_v4, %v769_v2  ;;  %v772_v6 = vpop.f32.mrb[2].mxu0  ;;  %v791_v7 = vpop.f32.mrb[0].mxu1 }
 0x109   :  { %v773_v8 = vpop.f32.mrb[3].mxu0  ;;  %v792_v9 = vpop.f32.mrb[1].mxu1 }
 0x10a   :  { %v485_v10 = vadd.f32 %v771_v5, %v689_v3  ;;  %v793_v11 = vadd.f32 %v792_v9, %v791_v7  ;;  %v794_v12 = vpop.f32.mrb[2].mxu1 }
 0x10b   :  { %v795_v13 = vpop.f32.mrb[3].mxu1 }
 0x10c   :  { %v525_v14 = vadd.f32 %v793_v11, %v485_v10 }
 0x126   :  { %v813_v15 = vpop.f32.mrb[4].mxu0 }
 0x127   :  { %v814_v16 = vpop.f32.mrb[5].mxu0 }
 0x128   :  { %v815_v17 = vadd.f32 %v814_v16, %v813_v15  ;;  %v816_v18 = vpop.f32.mrb[6].mxu0 }
 0x129   :  { %v817_v19 = vpop.f32.mrb[7].mxu0 }
 0x12a   :  { %v565_v20 = vadd.f32 %v815_v17, %v525_v14 }
 0x12c   :  { %v570_v21 = vmax.f32 %v565_v20, 0.0 }
 0x12e   :  { %v571_v22 = vpack.c.bf16 %v570_v21, %v570_v21 }
 0x130   :  { %845 = vmatmul.mubr.bf16.vlgmr.msra.gmra.mrb[4].mxu1 %v571_v22 }
 0x203   :  { %v677_v24 = vpop.f32.mrb[4].mxu1 }
 0x204   :  { %v678_v25 = vadd.f32 %v744_v23, %v677_v24  ;;  %v846_v26 = vpop.f32.mrb[5].mxu1 }
 0x205   :  { %v680_v27 = vpop.f32.mrb[6].mxu1 }
 0x206   :  { %683 = vst [vmem:[%s1033_s5] sm:$0xff] %v678_v25  ;;  %v847_v28 = vpop.f32.mrb[7].mxu1 }
 0x207   :  { %688 = vsyncpa [#allocation3], 1 }

// kernel: dens_tmnet_forward.4
= control target key start
LH: loop header
LB: loop body
LE: loop exit
PB: predicated region body
PF: predicated region fallthrough
CT: control target
= control target key end

     0   :  { %s2202_s23 = smov 0   ;;  %s2516_s0 = inlined_call_operand.vmem [shape: f32[3,256], index: 0, kind: input, shape index: {}]   ;;  %s2517_s1 = inlined_call_operand.vmem [shape: f32[2,64,1], index: 1, kind: input, shape index: {}]   ;;  %s2518_s2 = inlined_call_operand.vmem [shape: f32[2,64,1], index: 2, kind: input, shape index: {}]   ;;  %s2519_s3 = inlined_call_operand.vmem [shape: f32[2,128,128], index: 3, kind: input, shape index: {}]   ;;  %s2520_s4 = inlined_call_operand.vmem [shape: f32[64,3], index: 4, kind: input, shape index: {}]   ;;  %s2521_s5 = inlined_call_operand.vmem [shape: bf16[32,64], index: 5, kind: input, shape index: {}]   ;;  %s2522_s6 = inlined_call_operand.vmem [shape: f32[32,1], index: 6, kind: input, shape index: {}]   ;;  %s2523_s7 = inlined_call_operand.vmem [shape: bf16[16,32], index: 7, kind: input, shape index: {}]   ;;  %s2524_s8 = inlined_call_operand.vmem [shape: f32[16,1], index: 8, kind: input, shape index: {}]   ;;  %s2525_s9 = inlined_call_operand.vmem [shape: bf16[3,16], index: 9, kind: input, shape index: {}]   ;;  %s2526_s10 = inlined_call_operand.vmem [shape: f32[3,1], index: 10, kind: input, shape index: {}]   ;;  %s2527_s11 = inlined_call_operand.vmem [shape: f32[64,3], index: 11, kind: input, shape index: {}]   ;;  %s2528_s12 = inlined_call_operand.vmem [shape: bf16[32,64], index: 12, kind: input, shape index: {}]   ;;  %s2529_s13 = inlined_call_operand.vmem [shape: f32[32,1], index: 13, kind: input, shape index: {}]   ;;  %s2530_s14 = inlined_call_operand.vmem [shape: bf16[16,32], index: 14, kind: input, shape index: {}]   ;;  %s2531_s15 = inlined_call_operand.vmem [shape: f32[16,1], index: 15, kind: input, shape index: {}]   ;;  %s2532_s16 = inlined_call_operand.vmem [shape: bf16[1,16], index: 16, kind: input, shape index: {}]   ;;  %s2533_s17 = inlined_call_operand.<no memory space> [shape: f32[1,1], index: 17, kind: input, shape index: {}]   ;;  %s2534_s18 = inlined_call_operand.vmem [shape: f32[3,256], index: 18, kind: output, shape index: {0}]   ;;  %s2535_s19 = inlined_call_operand.vmem [shape: f32[3,256], index: 19, kind: output, shape index: {1}]   ;;  %s2536_s20 = inlined_call_operand.vmem [shape: f32[1,256], index: 20, kind: output, shape index: {2}]  }
   0x1   :  { %2538 = sst [smem:[#allocation3_spill]] %s2516_s0  ;;  %v26_v0 = vstv %s2533_s17 }
   0x2   :  { %2539 = sst [smem:[#allocation4_spill]] %s2517_s1  ;;  %27 = vst [vmem:[#allocation2] sm:$0x1] %v26_v0 }
   0x3   :  { %2540 = sst [smem:[#allocation5_spill]] %s2518_s2 }
   0x4   :  { %2541 = sst [smem:[#allocation6_spill]] %s2519_s3 }
   0x5   :  { %2542 = sst [smem:[#allocation7_spill]] %s2520_s4 }
   0x6 LB: > { %s1845_s24 = sadd.s32 4294967295, %s2086_s23   ;;  %p1849_p0 = scmp.ge.s32.totalorder %s2086_s23, 1  ;;  %s2086_s23 = sphi %s2202_s23, %s33_s23  }
   0x7   : > { %p598_p1 = scmp.lt.s32.totalorder %s2086_s23, 3 }
   0x9   : > { %p599_p2 = pnand %p1849_p0, %p598_p1 }
   0xa   : > { %s2543_s3 = sld [smem:[#allocation7_spill]] (!%p599_p2)  ;;  %v2088_v2 = vmov (!%p599_p2), 2   ;;  %v2089_v3 = vmov (!%p599_p2), 1   ;;  %v2090_v8 = vmov (!%p599_p2), 0   ;;  %p676_p3 = scmp.lt.s32.totalorder (!%p599_p2), %s1845_s24, 1  ;;  %v729_v16 = vld [vmem:[%s2522_s6 + $0x8] sm:$0xff] (!%p599_p2)  ;;  %v778_v35 = vlaneseq (!%p599_p2) }
   0xb   : > { %602 = sbr.rel (%p599_p2) target bundleno = 1828 (0x724), region = 92  ;;  %2043 = vset.pattern.permute.xlu0 (!%p599_p2), %v2088_v2  ;;  %2042 = vset.pattern.permute.xlu1 (!%p599_p2), %v2089_v3  ;;  %s2544_s27 = sld [smem:[#allocation4_spill]] (!%p599_p2)  ;;  %v731_v17 = vld [vmem:[%s2522_s6 + $0x18] sm:$0xff] (!%p599_p2)  ;;  %v735_v19 = vld [vmem:[%s2524_s8 + $0x8] sm:$0xff] (!%p599_p2)  ;;  %v728_v24 = vld [vmem:[%s2522_s6] sm:$0xff] (!%p599_p2)  ;;  %vm984_vm0 = vcmask (!%p599_p2), 523264  }
   0xc   : > { %v1257_v21 = vld [vmem:[%s2527_s11 + $0x8] sm:$0xff] (!%p599_p2)  ;;  %v730_v25 = vld [vmem:[%s2522_s6 + $0x10] sm:$0xff] (!%p599_p2)  ;;  %v2072_v26 = vld [vmem:[%s2521_s5] sm:$0xff] (!%p599_p2)   ;;  %v2307_v37 = vshrl.u32 (!%p599_p2), %v778_v35, 7  ;;  %s2545_s4 = sld [smem:[#allocation3_spill]] (!%p599_p2)  ;;  %vm2092_vm1 = vmmov (!%p599_p2), 0  }
   0xd   : > { %v734_v27 = vld [vmem:[%s2524_s8] sm:$0xff] (!%p599_p2)  ;;  %1925 = vmatprep.mubr.msk.bf16.mxu0 (!%p599_p2), %vm984_vm0, %v2072_v26  ;;  %vm1061_vm2 = vcmask (!%p599_p2), 261120   ;;  %s2546_s26 = sld [smem:[#allocation6_spill]] (!%p599_p2)  ;;  %vm1114_vm3 = vcmask (!%p599_p2), 130048   ;;  %s2547_s0 = sld [smem:[#allocation5_spill]] (!%p599_p2) }
   0xe   : > { %v737_v28 = vld [vmem:[%s2526_s10] sm:$0x7] (!%p599_p2)  ;;  %v824_v40 = vsub.s32 (!%p599_p2), 1, %v2307_v37  ;;  %v2317_v41 = vsub.s32 (!%p599_p2), 0, %v2307_v37  ;;  %v876_v45 = vsub.s32 (!%p599_p2), 2, %v2307_v37 }
  0x10   : > { %v716_v1 = vld [vmem:[%s2543_s3] sm:$0xff] (!%p599_p2)  ;;  %v718_v4 = vld [vmem:[%s2543_s3 + $0x10] sm:$0xff] (!%p599_p2)  ;;  %v717_v5 = vld [vmem:[%s2543_s3 + $0x8] sm:$0xff] (!%p599_p2) }
  0x11   : > { %843 = vperm.xlu0 (!%p599_p2), %2043, %v716_v1   ;;  %791 = vperm.xlu1 (!%p599_p2), %2042, %v716_v1   ;;  %v721_v6 = vld [vmem:[%s2543_s3 + $0x28] sm:$0xff] (!%p599_p2)  ;;  %v720_v7 = vld [vmem:[%s2543_s3 + $0x20] sm:$0xff] (!%p599_p2)  ;;  %v723_v9 = vld [vmem:[%s2543_s3 + $0x38] sm:$0xff] (!%p599_p2) }
  0x12   : > { %v719_v10 = vld [vmem:[%s2543_s3 + $0x18] sm:$0xff]  ;;  %s2549_s24 = smov (!%p676_p3, %s1845_s24), 1  ;;  %v722_v13 = vld [vmem:[%s2543_s3 + $0x30] sm:$0xff] }
  0x13   : > { %s1875_s25 = sshll.u32 %s2549_s24, 6  ;;  %s2305_s17 = sshll.u32 %s2549_s24, 2 }
  0x14   : > { %s2251_s28 = scalar_lea.vmem %s2544_s27, %s1875_s25  ;;  %s679_s29 = scalar_lea.vmem %s2545_s4, %s2305_s17 }
  0x15   : > { %851 = vperm.xlu0 %2043, %v718_v4   ;;  %795 = vperm.xlu1 %2042, %v717_v5   ;;  %v708_v11 = vld [vmem:[%s2251_s28] sm:$0xff]  ;;  %v709_v12 = vld [vmem:[%s2251_s28 + $0x8] sm:$0xff]  ;;  %v715_v15 = vld [vmem:[%s2251_s28 + $0x38] sm:$0xff]  ;;  %s1877_s22 = sshll.u32 %s2549_s24, 7  ;;  %s2429_s21 = scalar_lea.vmem %s2547_s0, %s1875_s25 }
  0x16   : > { %v712_v14 = vld [vmem:[%s2251_s28 + $0x20] sm:$0xff]  ;;  %v710_v18 = vld [vmem:[%s2251_s28 + $0x10] sm:$0xff]  ;;  %v711_v20 = vld [vmem:[%s2251_s28 + $0x18] sm:$0xff]  ;;  %s2383_s27 = scalar_lea.vmem %s2546_s26, %s1877_s22  ;;  %s702_s1 = scalar_lea.vmem %s2535_s19, %s2305_s17 }
  0x17   : > { %v713_v22 = vld [vmem:[%s2251_s28 + $0x28] sm:$0xff]  ;;  %v714_v23 = vld [vmem:[%s2251_s28 + $0x30] sm:$0xff]  ;;  %v2319_v42 = vld [vmem:[%s679_s29] sm:$0x7]  ;;  %s705_s4 = scalar_lea.vmem %s2536_s20, %s2549_s24 }
  0x18   : > { %v2324_v44 = vrot.slane %v2319_v42, %v824_v40  ;;  %v2329_v46 = vrot.slane %v2319_v42, %v2317_v41  ;;  %v2336_v51 = vrot.slane %v2319_v42, %v876_v45 }
  0x19   : > { %863 = vperm.xlu0 %2043, %v721_v6   ;;  %2044 = vset.pattern.permute.xlu1 %v2088_v2 }
  0x1a   : > { %847 = vperm.xlu1 %2044, %v717_v5  }
  0x1d   : > { %2051 = vset.pattern.permute.xlu0 %v2089_v3 }
  0x1e   : > { %807 = vperm.xlu0 %2051, %v720_v7   ;;  %2045 = vset.pattern.permute.xlu1 %v2090_v8 }
  0x1f   : > { %750 = vperm.xlu1 %2045, %v718_v4  }
  0x22   : > { %819 = vperm.xlu0 %2051, %v723_v9  }
  0x23   : > { %2046 = vset.pattern.permute.xlu1 %v2089_v3 }
  0x24   : > { %799 = vperm.xlu1 %2046, %v718_v4  }
  0x26   : > { %2054 = vset.pattern.permute.xlu0 %v2090_v8 }
  0x27   : > { %740 = vperm.xlu0 %2054, %v716_v1  }
  0x28   : > { %803 = vperm.xlu1 %2046, %v719_v10  }
  0x2b   : > { %745 = vperm.xlu0 %2054, %v717_v5  }
  0x2c   : > { %2047 = vset.pattern.permute.xlu1 %v2088_v2 }
  0x2d   : > { %855 = vperm.xlu1 %2047, %v719_v10  }
  0x2f   : > { %755 = vperm.xlu0 %2054, %v719_v10  }
  0x31   : > { %2048 = vset.pattern.permute.xlu1 %v2090_v8 }
  0x32   : > { %896 = vperm.xlu1 %2048, %v708_v11  }
  0x33   : > { %901 = vperm.xlu0 %2054, %v709_v12  }
  0x36   : > { %760 = vperm.xlu1 %2048, %v720_v7  }
  0x37   : > { %770 = vperm.xlu0 %2054, %v722_v13  }
  0x3a   : > { %765 = vperm.xlu1 %2048, %v721_v6  }
  0x3b   : > { %916 = vperm.xlu0 %2054, %v712_v14  }
  0x3e   : > { %2049 = vset.pattern.permute.xlu1 %v2089_v3 }
  0x3f   : > { %811 = vperm.xlu1 %2049, %v721_v6   ;;  %931 = vperm.xlu0 %2054, %v715_v15  }
  0x43   : > { %2050 = vset.pattern.permute.xlu1 %v2088_v2  ;;  %961 = vperm.xlu0 %2054, %v729_v16  }
  0x44   : > { %859 = vperm.xlu1 %2050, %v720_v7  }
  0x47   : > { %971 = vperm.xlu0 %2054, %v731_v17  }
  0x48   : > { %2052 = vset.pattern.permute.xlu1 %v2090_v8 }
  0x49   : > { %906 = vperm.xlu1 %2052, %v710_v18  }
  0x4b   : > { %1053 = vperm.xlu0 %2054, %v735_v19  }
  0x4d   : > { %911 = vperm.xlu1 %2052, %v711_v20  }
  0x4f   : > { %2059 = vset.pattern.permute.xlu0 %v2088_v2 }
  0x50   : > { %1387 = vperm.xlu0 %2059, %v1257_v21  }
  0x51   : > { %775 = vperm.xlu1 %2052, %v723_v9  }
  0x55   : > { %2053 = vset.pattern.permute.xlu1 %v2089_v3 }
  0x56   : > { %815 = vperm.xlu1 %2053, %v722_v13  }
  0x5a   : > { %2055 = vset.pattern.permute.xlu1 %v2088_v2 }
  0x5b   : > { %867 = vperm.xlu1 %2055, %v722_v13  }
  0x5f   : > { %871 = vperm.xlu1 %2055, %v723_v9  }
  0x63   : > { %2056 = vset.pattern.permute.xlu1 %v2090_v8 }
  0x64   : > { %921 = vperm.xlu1 %2056, %v713_v22  }
  0x68   : > { %926 = vperm.xlu1 %2056, %v714_v23  }
  0x6c   : > { %956 = vperm.xlu1 %2056, %v728_v24  }
  0x70   : > { %966 = vperm.xlu1 %2056, %v730_v25  }
  0x74   : > { %1048 = vperm.xlu1 %2056, %v734_v27  }
  0x78   : > { %1111 = vperm.xlu1 %2056, %v737_v28  }
  0x7c   : > { %1285 = vperm.xlu1 %2056, %v1257_v21  }
  0x80   : > { %2057 = vset.pattern.permute.xlu1 %v2089_v3 }
  0x81   : > { %1335 = vperm.xlu1 %2057, %v1257_v21  }
  0x85   : > { %2058 = vset.pattern.permute.xlu1 %v2088_v2 }
  0x90   : > { %v792_v29 = vpop.permute.xlu1 %791  ;;  %v844_v30 = vpop.permute.xlu0 %843 }
  0x91   : > { %v826_v50 = vmul.f32 %v2324_v44, %v792_v29  ;;  %v878_v55 = vmul.f32 %v2336_v51, %v844_v30 }
  0x94   : > { %v796_v31 = vpop.permute.xlu1 %795  ;;  %v852_v32 = vpop.permute.xlu0 %851 }
  0x95   : > { %v827_v53 = vmul.f32 %v2324_v44, %v796_v31  ;;  %v880_v16 = vmul.f32 %v2336_v51, %v852_v32 }
  0x98   : > { %v2302_v33 = vpop.permute.xlu0 %863 }
  0x99   : > { %v848_v34 = vpop.permute.xlu1 %847 }
  0x9a   : > { %v879_v60 = vmul.f32 %v2336_v51, %v848_v34 }
  0x9d   : > { %v808_v36 = vpop.permute.xlu0 %807 }
  0x9e   : > { %v751_v38 = vpop.permute.xlu1 %750  ;;  %v830_v32 = vmul.f32 %v2324_v44, %v808_v36 }
  0x9f   : > { %v784_v13 = vmul.f32 %v2329_v46, %v751_v38 }
  0xa1   : > { %v2313_v39 = vpop.permute.xlu0 %819 }
  0xa3   : > { %v800_v43 = vpop.permute.xlu1 %799 }
  0xa4   : > { %v828_v12 = vmul.f32 %v2324_v44, %v800_v43 }
  0xa6   : > { %v741_v47 = vpop.permute.xlu0 %740  ;;  %v836_v17 = vadd.f32 %v828_v12, %v784_v13 }
  0xa7   : > { %v804_v48 = vpop.permute.xlu1 %803  ;;  %v782_v49 = vmul.f32 %v2329_v46, %v741_v47 }
  0xa8   : > { %v829_v18 = vmul.f32 %v2324_v44, %v804_v48  ;;  %v888_v22 = vadd.f32 %v880_v16, %v836_v17 }
  0xa9   : > { %v834_v56 = vadd.f32 %v826_v50, %v782_v49 }
  0xaa   : > { %v746_v52 = vpop.permute.xlu0 %745 }
  0xab   : > { %v783_v54 = vmul.f32 %v2329_v46, %v746_v52  ;;  %v886_v61 = vadd.f32 %v878_v55, %v834_v56  ;;  %v833_v52 = vmul.f32 %v2324_v44, %v2313_v39 }
  0xac   : > { %v856_v57 = vpop.permute.xlu1 %855 }
  0xad   : > { %v835_v58 = vadd.f32 %v827_v53, %v783_v54  ;;  %v881_v21 = vmul.f32 %v2336_v51, %v856_v57  ;;  %v883_v57 = vmul.f32 %v2336_v51, %v2302_v33 }
  0xae   : > { %v756_v59 = vpop.permute.xlu0 %755 }
  0xaf   : > { %v887_v63 = vadd.f32 %v879_v60, %v835_v58  ;;  %v785_v14 = vmul.f32 %v2329_v46, %v756_v59 }
  0xb1   : > { %v897_v62 = vpop.permute.xlu1 %896  ;;  %v837_v19 = vadd.f32 %v829_v18, %v785_v14  ;;  %v2091_v14 = vmov 0.0  }
  0xb2   : > { %v934_v0 = vadd.f32 %v897_v62, %v886_v61  ;;  %v902_v1 = vpop.permute.xlu0 %901  ;;  %1929 = vmatprep.subr.bf16.mxu1 %v2091_v14  ;;  %1933 = vmatprep.mubr.msk.bf16.mxu1 %vm2092_vm1, %v2091_v14 }
  0xb3   : > { %v935_v4 = vadd.f32 %v902_v1, %v887_v63  ;;  %v889_v24 = vadd.f32 %v881_v21, %v837_v19 }
  0xb4   : > { %v942_v5 = vmax.f32 %v934_v0, 0.0 }
  0xb5   : > { %v943_v6 = vmax.f32 %v935_v4, 0.0  ;;  %v761_v7 = vpop.permute.xlu1 %760 }
  0xb6   : > { %v786_v34 = vmul.f32 %v2329_v46, %v761_v7  ;;  %v771_v35 = vpop.permute.xlu0 %770 }
  0xb7   : > { %v950_v9 = vpack.c.bf16 %v943_v6, %v942_v5  ;;  %v788_v60 = vmul.f32 %v2329_v46, %v771_v35  ;;  %v1161_v35 = vld [vmem:[%s2383_s27] sm:$0xff] }
  0xb8   : > { %v838_v48 = vadd.f32 %v830_v32, %v786_v34  ;;  %v2074_v34 = vld [vmem:[%s2523_s7] sm:$0xff]  }
  0xb9   : > { %v766_v10 = vpop.permute.xlu1 %765  ;;  %1917 = vmatprep.subr.bf16.mxu0 %v950_v9 }
  0xba   : > { %1918 = vmatpush3.bf16.msra.mxu0 %v950_v9  ;;  %v787_v49 = vmul.f32 %v2329_v46, %v766_v10  ;;  %v917_v36 = vpop.permute.xlu0 %916 }
  0xbe   : > { %v812_v11 = vpop.permute.xlu1 %811  ;;  %v932_v5 = vpop.permute.xlu0 %931 }
  0xbf   : > { %v831_v38 = vmul.f32 %v2324_v44, %v812_v11 }
  0xc1   : > { %v839_v53 = vadd.f32 %v831_v38, %v787_v49  ;;  %v1162_v38 = vld [vmem:[%s2383_s27 + $0x8] sm:$0xff]  ;;  %v1164_v49 = vld [vmem:[%s2383_s27 + $0x18] sm:$0xff] }
  0xc2   : > { %v962_v16 = vpop.permute.xlu0 %961 }
  0xc3   : > { %v860_v15 = vpop.permute.xlu1 %859  ;;  %v891_v0 = vadd.f32 %v883_v57, %v839_v53  ;;  %v1166_v53 = vld [vmem:[%s2383_s27 + $0x28] sm:$0xff] }
  0xc4   : > { %v882_v43 = vmul.f32 %v2336_v51, %v860_v15 }
  0xc6   : > { %v890_v54 = vadd.f32 %v882_v43, %v838_v48  ;;  %v972_v21 = vpop.permute.xlu0 %971  ;;  %v1163_v43 = vld [vmem:[%s2383_s27 + $0x10] sm:$0xff]  ;;  %v2005_v48 = vpack.c.bf16 %v1162_v38, %v1161_v35  ;;  %v1268_v35 = vld [vmem:[%s2529_s13] sm:$0xff] }
  0xc8   : > { %v907_v20 = vpop.permute.xlu1 %906  ;;  %v938_v61 = vadd.f32 %v917_v36, %v890_v54  ;;  %v1168_v36 = vld [vmem:[%s2383_s27 + $0x38] sm:$0xff] }
  0xc9   : > { %v936_v23 = vadd.f32 %v907_v20, %v888_v22 }
  0xca   : > { %v946_v7 = vmax.f32 %v938_v61, 0.0  ;;  %v1054_v61 = vpop.permute.xlu0 %1053 }
  0xcb   : > { %v944_v27 = vmax.f32 %v936_v23, 0.0 }
  0xcc   : > { %v912_v25 = vpop.permute.xlu1 %911 }
  0xcd   : > { %v937_v26 = vadd.f32 %v912_v25, %v889_v24 }
  0xcf   : > { %v945_v28 = vmax.f32 %v937_v26, 0.0 }
  0xd0   : > { %v776_v29 = vpop.permute.xlu1 %775 }
  0xd1   : > { %v951_v30 = vpack.c.bf16 %v945_v28, %v944_v27  ;;  %v789_v50 = vmul.f32 %v2329_v46, %v776_v29 }
  0xd3   : > { %1919 = vmatprep.subr.bf16.mxu0 %v951_v30  ;;  %v841_v58 = vadd.f32 %v833_v52, %v789_v50  ;;  %v2008_v50 = vpack.c.bf16 %v1164_v49, %v1163_v43  ;;  %v1165_v52 = vld [vmem:[%s2383_s27 + $0x20] sm:$0xff] }
  0xd4   : > { %1920 = vmatpush3.bf16.msra.mxu0 %v951_v30  ;;  %v2011_v54 = vpack.c.bf16 %v1166_v53, %v1165_v52 }
  0xd5   : > { %v816_v31 = vpop.permute.xlu1 %815 }
  0xd6   : > { %v832_v59 = vmul.f32 %v2324_v44, %v816_v31 }
  0xd8   : > { %v840_v1 = vadd.f32 %v832_v59, %v788_v60 }
  0xda   : > { %v868_v47 = vpop.permute.xlu1 %867 }
  0xdb   : > { %v884_v62 = vmul.f32 %v2336_v51, %v868_v47  ;;  %v2093_v47 = vmov 0.0|0.0  }
  0xdd   : > { %v892_v10 = vadd.f32 %v884_v62, %v840_v1 }
  0xde   : > { %v872_v55 = vpop.permute.xlu1 %871 }
  0xdf   : > { %v885_v56 = vmul.f32 %v2336_v51, %v872_v55  ;;  %v2073_v51 = vld [vmem:[%s2521_s5 + $0x8] sm:$0xff]   ;;  %v1167_v55 = vld [vmem:[%s2383_s27 + $0x30] sm:$0xff] }
  0xe1   : > { %v893_v63 = vadd.f32 %v885_v56, %v841_v58  ;;  %v2014_v56 = vpack.c.bf16 %v1168_v36, %v1167_v55 }
  0xe3   : > { %v922_v39 = vpop.permute.xlu1 %921  ;;  %v941_v6 = vadd.f32 %v932_v5, %v893_v63  ;;  %v736_v5 = vld [vmem:[%s2525_s9] sm:$0x3] }
  0xe4   : > { %v939_v4 = vadd.f32 %v922_v39, %v891_v0 }
  0xe5   : > { %v949_v44 = vmax.f32 %v941_v6, 0.0  ;;  %v1169_v6 = vld [vmem:[%s2383_s27 + $0x40] sm:$0xff] }
  0xe6   : > { %v947_v9 = vmax.f32 %v939_v4, 0.0 }
  0xe7   : > { %v927_v11 = vpop.permute.xlu1 %926 }
  0xe8   : > { %v952_v33 = vpack.c.bf16 %v947_v9, %v946_v7  ;;  %v940_v12 = vadd.f32 %v927_v11, %v892_v10  ;;  %v1170_v7 = vld [vmem:[%s2383_s27 + $0x48] sm:$0xff]  ;;  %v1171_v10 = vld [vmem:[%s2383_s27 + $0x50] sm:$0xff]  ;;  %v1172_v11 = vld [vmem:[%s2383_s27 + $0x58] sm:$0xff] }
  0xe9   : > { %v2017_v9 = vpack.c.bf16 %v1170_v7, %v1169_v6 }
  0xea   : > { %v948_v13 = vmax.f32 %v940_v12, 0.0  ;;  %1921 = vmatprep.subr.bf16.mxu0 %v952_v33  ;;  %v1173_v12 = vld [vmem:[%s2383_s27 + $0x60] sm:$0xff] }
  0xeb   : > { %1922 = vmatpush3.bf16.msra.mxu0 %v952_v33  ;;  %v957_v15 = vpop.permute.xlu1 %956  ;;  %v2020_v33 = vpack.c.bf16 %v1172_v11, %v1171_v10 }
  0xec   : > { %v953_v46 = vpack.c.bf16 %v949_v44, %v948_v13  ;;  %v1174_v13 = vld [vmem:[%s2383_s27 + $0x68] sm:$0xff] }
  0xed   : > { %v2023_v44 = vpack.c.bf16 %v1174_v13, %v1173_v12 }
  0xee   : > { %1923 = vmatprep.subr.bf16.mxu0 %v953_v46 }
  0xef   : > { %1924 = vmatpush3.bf16.msra.mxu0 %v953_v46  ;;  %v967_v17 = vpop.permute.xlu1 %966  ;;  %v1175_v46 = vld [vmem:[%s2383_s27 + $0x70] sm:$0xff] }
  0xf0   : > { %2004 = vmatprep.subr.bf16.mxu0 %v2093_v47 }
  0xf2   : > { %1926 = vmatmul.mubr.msk.bf16.vlgmr.msra.gmra.mrb[0].mxu0 %vm984_vm0, %v2073_v51  ;;  %v1176_v51 = vld [vmem:[%s2383_s27 + $0x78] sm:$0xff]  ;;  %s698_s27 = scalar_lea.vmem %s2534_s18, %s2305_s17 }
  0xf3   : > { %1975 = vmatprep.mubr.msk.f32.mxu0 %vm2092_vm1, %v2091_v14  ;;  %2006 = vmatpush3.bf16.msra.mxu0 %v2005_v48  ;;  %v1049_v57 = vpop.permute.xlu1 %1048 }
  0xf4   : > { %2007 = vmatprep.subr.bf16.mxu0 %v2093_v47 }
  0xf7   : > { %2009 = vmatpush3.bf16.msra.mxu0 %v2008_v50  ;;  %v1112_v38 = vpop.permute.xlu1 %1111 }
  0xf8   : > { %2010 = vmatprep.subr.bf16.mxu0 %v2093_v47 }
  0xfb   : > { %2012 = vmatpush3.bf16.msra.mxu0 %v2011_v54  ;;  %v2075_v54 = vld [vmem:[%s2528_s12] sm:$0xff]   ;;  %v1286_v55 = vpop.permute.xlu1 %1285 }
  0xfc   : > { %2013 = vmatprep.subr.bf16.mxu0 %v2093_v47 }
  0xff   : > { %2015 = vmatpush3.bf16.msra.mxu0 %v2014_v56 }
 0x100   : > { %2016 = vmatprep.subr.bf16.mxu0 %v2093_v47  ;;  %v1336_v36 = vpop.permute.xlu1 %1335 }
 0x103   : > { %2018 = vmatpush3.bf16.msra.mxu0 %v2017_v9 }
 0x104   : > { %2019 = vmatprep.subr.bf16.mxu0 %v2093_v47 }
 0x107   : > { %2021 = vmatpush3.bf16.msra.mxu0 %v2020_v33 }
 0x108   : > { %2022 = vmatprep.subr.bf16.mxu0 %v2093_v47 }
 0x10b   : > { %2024 = vmatpush3.bf16.msra.mxu0 %v2023_v44 }
 0x10c   : > { %2025 = vmatprep.subr.bf16.mxu0 %v2093_v47 }
 0x1c5   : > { %v1927_v18 = vpop.f32.mrb[0].mxu0 }
 0x1c6   : > { %v1034_v19 = vadd.f32 %v1927_v18, %v967_v17  ;;  %v1025_v20 = vpop.f32.mrb[1].mxu0  ;;  %v1259_v17 = vld [vmem:[%s2527_s11 + $0x18] sm:$0xff]  ;;  %v1258_v18 = vld [vmem:[%s2527_s11 + $0x10] sm:$0xff] }
 0x1c7   : > { %v1026_v22 = vadd.f32 %v1025_v20, %v957_v15  ;;  %v1928_v23 = vpop.f32.mrb[2].mxu0  ;;  %v2026_v15 = vpack.c.bf16 %v1176_v51, %v1175_v46  ;;  %1395 = vperm.xlu0 %2059, %v1259_v17   ;;  %v1263_v20 = vld [vmem:[%s2527_s11 + $0x38] sm:$0xff] }
 0x1c8   : > { %v1037_v24 = vadd.f32 %v1928_v23, %v972_v21  ;;  %v1028_v25 = vpop.f32.mrb[3].mxu0  ;;  %v1042_v27 = vmax.f32 %v1034_v19, 0.0  ;;  %v1261_v19 = vld [vmem:[%s2527_s11 + $0x28] sm:$0xff]  ;;  %v1248_v21 = vld [vmem:[%s2429_s21] sm:$0xff] }
 0x1c9   : > { %v1029_v26 = vadd.f32 %v1028_v25, %v962_v16  ;;  %v1040_v29 = vmax.f32 %v1026_v22, 0.0  ;;  %2027 = vmatpush3.bf16.msra.mxu0 %v2026_v15  ;;  %v1256_v16 = vld [vmem:[%s2527_s11] sm:$0xff]  ;;  %v1249_v22 = vld [vmem:[%s2429_s21 + $0x8] sm:$0xff] }
 0x1ca   : > { %v1043_v28 = vmax.f32 %v1037_v24, 0.0  ;;  %1383 = vperm.xlu1 %2058, %v1256_v16   ;;  %v1260_v23 = vld [vmem:[%s2527_s11 + $0x20] sm:$0xff]  ;;  %v1250_v24 = vld [vmem:[%s2429_s21 + $0x10] sm:$0xff] }
 0x1cb   : > { %v1041_v30 = vmax.f32 %v1029_v26, 0.0  ;;  %2063 = vset.pattern.permute.xlu0 %v2089_v3  ;;  %v1252_v25 = vld [vmem:[%s2429_s21 + $0x20] sm:$0xff]  ;;  %v1255_v26 = vld [vmem:[%s2429_s21 + $0x38] sm:$0xff] }
 0x1cc   : > { %v1045_v31 = vpack.c.bf16 %v1043_v28, %v1042_v27  ;;  %1331 = vperm.xlu0 %2063, %v1256_v16   ;;  %v1269_v27 = vld [vmem:[%s2529_s13 + $0x8] sm:$0xff]  ;;  %v1271_v28 = vld [vmem:[%s2529_s13 + $0x18] sm:$0xff] }
 0x1cd   : > { %v1044_v32 = vpack.c.bf16 %v1041_v30, %v1040_v29  ;;  %v1251_v29 = vld [vmem:[%s2429_s21 + $0x18] sm:$0xff]  ;;  %v1275_v30 = vld [vmem:[%s2531_s15 + $0x8] sm:$0xff] }
 0x1ce   : > { %2060 = vset.pattern.permute.xlu1 %v2090_v8 }
 0x1cf   : > { %1930 = vmatpush3.bf16.msra.mxu1 %v1044_v32  ;;  %1290 = vperm.xlu1 %2060, %v1258_v18   ;;  %v1253_v32 = vld [vmem:[%s2429_s21 + $0x28] sm:$0xff] }
 0x1d0   : > { %1931 = vmatprep.subr.bf16.mxu1 %v2091_v14  ;;  %1339 = vperm.xlu0 %2063, %v1258_v18  }
 0x1d3   : > { %1932 = vmatpush3.bf16.msra.mxu1 %v1045_v31  ;;  %1295 = vperm.xlu1 %2060, %v1259_v17   ;;  %v1262_v31 = vld [vmem:[%s2527_s11 + $0x30] sm:$0xff] }
 0x1d4   : > { %1937 = vmatprep.subr.bf16.mxu1 %v2091_v14  ;;  %1351 = vperm.xlu0 %2063, %v1261_v19  }
 0x1d6   : > { %1934 = vmatmul.mubr.msk.bf16.vlgmr.msra.gmra.mrb[0].mxu1 %vm1061_vm2, %v2074_v34  ;;  %v1254_v34 = vld [vmem:[%s2429_s21 + $0x30] sm:$0xff] }
 0x1d7   : > { %1939 = vmatprep.mubr.msk.bf16.mxu1 %vm2092_vm1, %v2091_v14  ;;  %2061 = vset.pattern.permute.xlu1 %v2089_v3 }
 0x1d8   : > { %1343 = vperm.xlu1 %2061, %v1259_v17   ;;  %1359 = vperm.xlu0 %2063, %v1263_v20  }
 0x1dc   : > { %2062 = vset.pattern.permute.xlu1 %v2088_v2  ;;  %2069 = vset.pattern.permute.xlu0 %v2090_v8 }
 0x1dd   : > { %1391 = vperm.xlu1 %2062, %v1258_v18   ;;  %1280 = vperm.xlu0 %2069, %v1256_v16  }
 0x1e1   : > { %2064 = vset.pattern.permute.xlu1 %v2090_v8  ;;  %1300 = vperm.xlu0 %2069, %v1260_v23  }
 0x1e2   : > { %1436 = vperm.xlu1 %2064, %v1248_v21  }
 0x1e5   : > { %1446 = vperm.xlu0 %2069, %v1250_v24  }
 0x1e6   : > { %1441 = vperm.xlu1 %2064, %v1249_v22  }
 0x1e9   : > { %1315 = vperm.xlu0 %2069, %v1263_v20  }
 0x1ea   : > { %1305 = vperm.xlu1 %2064, %v1261_v19  }
 0x1ed   : > { %1456 = vperm.xlu0 %2069, %v1252_v25  }
 0x1ee   : > { %2065 = vset.pattern.permute.xlu1 %v2089_v3 }
 0x1ef   : > { %1347 = vperm.xlu1 %2065, %v1260_v23  }
 0x1f1   : > { %1471 = vperm.xlu0 %2069, %v1255_v26  }
 0x1f3   : > { %2066 = vset.pattern.permute.xlu1 %v2088_v2 }
 0x1f4   : > { %1399 = vperm.xlu1 %2066, %v1260_v23  }
 0x1f5   : > { %1501 = vperm.xlu0 %2069, %v1269_v27  }
 0x1f8   : > { %1403 = vperm.xlu1 %2066, %v1261_v19  }
 0x1f9   : > { %1511 = vperm.xlu0 %2069, %v1271_v28  }
 0x1fc   : > { %2067 = vset.pattern.permute.xlu1 %v2090_v8 }
 0x1fd   : > { %1451 = vperm.xlu1 %2067, %v1251_v29   ;;  %1592 = vperm.xlu0 %2069, %v1275_v30  }
 0x201   : > { %1310 = vperm.xlu1 %2067, %v1262_v31  }
 0x205   : > { %2068 = vset.pattern.permute.xlu1 %v2089_v3  ;;  %v1270_v3 = vld [vmem:[%s2529_s13 + $0x10] sm:$0xff] }
 0x206   : > { %1355 = vperm.xlu1 %2068, %v1262_v31  }
 0x20a   : > { %2070 = vset.pattern.permute.xlu1 %v2088_v2  ;;  %v1274_v2 = vld [vmem:[%s2531_s15] sm:$0xff] }
 0x20b   : > { %1407 = vperm.xlu1 %2070, %v1262_v31  }
 0x20f   : > { %1411 = vperm.xlu1 %2070, %v1263_v20  }
 0x213   : > { %2071 = vset.pattern.permute.xlu1 %v2090_v8  ;;  %v1277_v8 = vld [vmem:[#allocation2] sm:$0x1] }
 0x214   : > { %1461 = vperm.xlu1 %2071, %v1253_v32  }
 0x218   : > { %1466 = vperm.xlu1 %2071, %v1254_v34  }
 0x21c   : > { %1496 = vperm.xlu1 %2071, %v1268_v35  }
 0x220   : > { %1506 = vperm.xlu1 %2071, %v1270_v3  }
 0x224   : > { %1587 = vperm.xlu1 %2071, %v1274_v2  }
 0x228   : > { %1649 = vperm.xlu1 %2071, %v1277_v8  }
 0x249   : > { %v1384_v56 = vpop.permute.xlu1 %1383 }
 0x2a9   : > { %v1099_v58 = vpop.f32.mrb[0].mxu1 }
 0x2aa   : > { %v1100_v59 = vadd.f32 %v1099_v58, %v1049_v57  ;;  %v1935_v60 = vpop.f32.mrb[1].mxu1  ;;  %v1291_v57 = vpop.permute.xlu1 %1290 }
 0x2ab   : > { %v1102_v62 = vpop.f32.mrb[2].mxu1 }
 0x2ac   : > { %v1103_v63 = vadd.f32 %v1102_v62, %v1054_v61  ;;  %v1936_v0 = vpop.f32.mrb[3].mxu1  ;;  %v1106_v39 = vmax.f32 %v1100_v59, 0.0 }
 0x2ae   : > { %v1107_v1 = vmax.f32 %v1103_v63, 0.0  ;;  %v1296_v58 = vpop.permute.xlu1 %1295  ;;  %v1388_v63 = vpop.permute.xlu0 %1387 }
 0x2b0   : > { %v1108_v4 = vpack.c.bf16 %v1107_v1, %v1106_v39 }
 0x2b2   : > { %1938 = vmatpush3.bf16.msra.mxu1 %v1108_v4  ;;  %v1344_v59 = vpop.permute.xlu1 %1343  ;;  %v1396_v0 = vpop.permute.xlu0 %1395 }
 0x2b5   : > { %1940 = vmatmul.mubr.msk.bf16.vlgmr.msra.gmra.mrb[4].mxu1 %vm1114_vm3, %v736_v5 }
 0x2b6   : > { %1986 = vmatprep.mubr.msk.bf16.mxu1 %vm984_vm0, %v2075_v54  ;;  %v1392_v60 = vpop.permute.xlu1 %1391  ;;  %v1332_v1 = vpop.permute.xlu0 %1331 }
 0x2ba   : > { %v1437_v61 = vpop.permute.xlu1 %1436  ;;  %v1340_v5 = vpop.permute.xlu0 %1339 }
 0x2be   : > { %v1442_v62 = vpop.permute.xlu1 %1441  ;;  %v1352_v7 = vpop.permute.xlu0 %1351 }
 0x2c2   : > { %v1360_v10 = vpop.permute.xlu0 %1359 }
 0x2c6   : > { %v1281_v33 = vpop.permute.xlu0 %1280 }
 0x2ca   : > { %v1301_v13 = vpop.permute.xlu0 %1300 }
 0x2ce   : > { %v1447_v46 = vpop.permute.xlu0 %1446 }
 0x2d2   : > { %v1316_v32 = vpop.permute.xlu0 %1315 }
 0x388   : > { %v1152_v43 = vpop.f32.mrb[4].mxu1 }
 0x389   : > { %v1153_v47 = vadd.f32 %v1152_v43, %v1112_v38  ;;  %v1941_v48 = vpop.f32.mrb[5].mxu1 }
 0x38a   : > { %v1155_v49 = vpop.f32.mrb[6].mxu1 }
 0x38b   : > { %2078 = vtanh.f32 %v1153_v47  ;;  %v1942_v50 = vpop.f32.mrb[7].mxu1 }
 0x395   : > { %v2079_v52 = vpop.eup %2078 }
 0x396   : > { %v1159_v53 = vadd.f32 %v2079_v52, %v2319_v42  ;;  %v1306_v42 = vpop.permute.xlu1 %1305 }
 0x398   : > { %1160 = vst [vmem:[%s698_s27] sm:$0x7] %v1159_v53  ;;  %1976 = vmatmul.mubr.f32.vlgmr.msra.gmra.mrb[4].mxu0 %v1159_v53 }
 0x39a   : > { %v1348_v39 = vpop.permute.xlu1 %1347 }
 0x39e   : > { %v1400_v4 = vpop.permute.xlu1 %1399 }
 0x3a2   : > { %v1404_v6 = vpop.permute.xlu1 %1403 }
 0x3a6   : > { %v1452_v9 = vpop.permute.xlu1 %1451 }
 0x3aa   : > { %v1311_v11 = vpop.permute.xlu1 %1310 }
 0x3ae   : > { %v1356_v12 = vpop.permute.xlu1 %1355 }
 0x3b2   : > { %v1408_v44 = vpop.permute.xlu1 %1407 }
 0x3b6   : > { %v1412_v27 = vpop.permute.xlu1 %1411 }
 0x46b   : > { %v1243_v51 = vpop.f32.mrb[4].mxu0 }
 0x46c   : > { %1247 = vst [vmem:[%s702_s1] sm:$0x7] %v1243_v51  ;;  %v1321_v15 = vrot.slane %v1243_v51, %v2317_v41  ;;  %v1365_v16 = vrot.slane %v1243_v51, %v824_v40  ;;  %v1417_v17 = vrot.slane %v1243_v51, %v876_v45  ;;  %v1977_v18 = vpop.f32.mrb[5].mxu0 }
 0x46e   : > { %v1322_v19 = vmul.f32 %v1321_v15, %v1281_v33  ;;  %v1323_v20 = vmul.f32 %v1321_v15, %v1286_v55  ;;  %v1366_v21 = vmul.f32 %v1365_v16, %v1332_v1  ;;  %v1367_v22 = vmul.f32 %v1365_v16, %v1336_v36 }
 0x46f   : > { %v1418_v23 = vmul.f32 %v1417_v17, %v1384_v56  ;;  %v1419_v24 = vmul.f32 %v1417_v17, %v1388_v63  ;;  %v1324_v25 = vmul.f32 %v1321_v15, %v1291_v57  ;;  %v1325_v26 = vmul.f32 %v1321_v15, %v1296_v58  ;;  %v1462_v57 = vpop.permute.xlu1 %1461 }
 0x470   : > { %v1374_v28 = vadd.f32 %v1366_v21, %v1322_v19  ;;  %v1375_v29 = vadd.f32 %v1367_v22, %v1323_v20  ;;  %v1368_v30 = vmul.f32 %v1365_v16, %v1340_v5  ;;  %v1369_v31 = vmul.f32 %v1365_v16, %v1344_v59 }
 0x471   : > { %v1420_v34 = vmul.f32 %v1417_v17, %v1392_v60  ;;  %v1421_v40 = vmul.f32 %v1417_v17, %v1396_v0  ;;  %v1326_v35 = vmul.f32 %v1321_v15, %v1301_v13  ;;  %v1327_v37 = vmul.f32 %v1321_v15, %v1306_v42  ;;  %v1457_v42 = vpop.permute.xlu0 %1456 }
 0x472   : > { %v1426_v45 = vadd.f32 %v1418_v23, %v1374_v28  ;;  %v1427_v3 = vadd.f32 %v1419_v24, %v1375_v29  ;;  %v1376_v2 = vadd.f32 %v1368_v30, %v1324_v25  ;;  %v1377_v8 = vadd.f32 %v1369_v31, %v1325_v26 }
 0x473   : > { %v1370_v38 = vmul.f32 %v1365_v16, %v1348_v39  ;;  %v1371_v43 = vmul.f32 %v1365_v16, %v1352_v7  ;;  %v1422_v47 = vmul.f32 %v1417_v17, %v1400_v4  ;;  %v1423_v48 = vmul.f32 %v1417_v17, %v1404_v6  ;;  %v1467_v19 = vpop.permute.xlu1 %1466 }
 0x474   : > { %v1474_v49 = vadd.f32 %v1437_v61, %v1426_v45  ;;  %v1475_v50 = vadd.f32 %v1442_v62, %v1427_v3  ;;  %v1428_v52 = vadd.f32 %v1420_v34, %v1376_v2  ;;  %v1429_v53 = vadd.f32 %v1421_v40, %v1377_v8 }
 0x475   : > { %v1378_v54 = vadd.f32 %v1370_v38, %v1326_v35  ;;  %v1379_v55 = vadd.f32 %v1371_v43, %v1327_v37  ;;  %v1328_v36 = vmul.f32 %v1321_v15, %v1311_v11  ;;  %v1329_v56 = vmul.f32 %v1321_v15, %v1316_v32  ;;  %v2077_v43 = vld [vmem:[%s2530_s14] sm:$0xff]  }
 0x476   : > { %v1482_v58 = vmax.f32 %v1474_v49, 0.0  ;;  %v1483_v59 = vmax.f32 %v1475_v50, 0.0  ;;  %v1476_v60 = vadd.f32 %v1447_v46, %v1428_v52  ;;  %v1477_v63 = vadd.f32 %v1452_v9, %v1429_v53 }
 0x477   : > { %v1430_v0 = vadd.f32 %v1422_v47, %v1378_v54  ;;  %v1431_v1 = vadd.f32 %v1423_v48, %v1379_v55  ;;  %v1372_v39 = vmul.f32 %v1365_v16, %v1356_v12  ;;  %v1373_v5 = vmul.f32 %v1365_v16, %v1360_v10  ;;  %v1472_v12 = vpop.permute.xlu0 %1471  ;;  %v1497_v24 = vpop.permute.xlu1 %1496 }
 0x478   : > { %v1490_v4 = vpack.c.bf16 %v1483_v59, %v1482_v58  ;;  %v1484_v6 = vmax.f32 %v1476_v60, 0.0  ;;  %v1485_v61 = vmax.f32 %v1477_v63, 0.0  ;;  %v1424_v62 = vmul.f32 %v1417_v17, %v1408_v44  ;;  %v1276_v58 = vld [vmem:[%s2532_s16] sm:$0x1] }
 0x479   : > { %v1478_v7 = vadd.f32 %v1457_v42, %v1430_v0  ;;  %v1479_v33 = vadd.f32 %v1462_v57, %v1431_v1  ;;  %v1380_v13 = vadd.f32 %v1372_v39, %v1328_v36  ;;  %v1381_v51 = vadd.f32 %v1373_v5, %v1329_v56 }
 0x47a   : > { %1978 = vmatprep.subr.bf16.mxu1 %v1490_v4  ;;  %v1491_v11 = vpack.c.bf16 %v1485_v61, %v1484_v6  ;;  %v1425_v15 = vmul.f32 %v1417_v17, %v1412_v27  ;;  %v2076_v17 = vld [vmem:[%s2528_s12 + $0x8] sm:$0xff]  }
 0x47b   : > { %1979 = vmatpush3.bf16.msra.mxu1 %v1490_v4  ;;  %v1486_v18 = vmax.f32 %v1478_v7, 0.0  ;;  %v1487_v46 = vmax.f32 %v1479_v33, 0.0  ;;  %v1432_v9 = vadd.f32 %v1424_v62, %v1380_v13  ;;  %v1502_v25 = vpop.permute.xlu0 %1501  ;;  %v1507_v26 = vpop.permute.xlu1 %1506 }
 0x47c   : > { %1980 = vmatprep.subr.bf16.mxu1 %v1491_v11  ;;  %v1433_v20 = vadd.f32 %v1425_v15, %v1381_v51 }
 0x47d   : > { %v1480_v10 = vadd.f32 %v1467_v19, %v1432_v9  ;;  %v1492_v16 = vpack.c.bf16 %v1487_v46, %v1486_v18 }
 0x47e   : > { %v1481_v21 = vadd.f32 %v1472_v12, %v1433_v20 }
 0x47f   : > { %1981 = vmatpush3.bf16.msra.mxu1 %v1491_v11  ;;  %v1488_v44 = vmax.f32 %v1480_v10, 0.0  ;;  %v1512_v30 = vpop.permute.xlu0 %1511  ;;  %v1588_v47 = vpop.permute.xlu1 %1587 }
 0x480   : > { %1982 = vmatprep.subr.bf16.mxu1 %v1492_v16  ;;  %v1489_v22 = vmax.f32 %v1481_v21, 0.0 }
 0x482   : > { %v1493_v23 = vpack.c.bf16 %v1489_v22, %v1488_v44 }
 0x483   : > { %1983 = vmatpush3.bf16.msra.mxu1 %v1492_v16  ;;  %v1593_v52 = vpop.permute.xlu0 %1592 }
 0x484   : > { %1984 = vmatprep.subr.bf16.mxu1 %v1493_v23 }
 0x487   : > { %1985 = vmatpush3.bf16.msra.mxu1 %v1493_v23 }
 0x488   : > { %1990 = vmatprep.subr.bf16.mxu1 %v2091_v14 }
 0x48a   : > { %1987 = vmatmul.mubr.msk.bf16.vlgmr.msra.gmra.mrb[8].mxu1 %vm984_vm0, %v2076_v17 }
 0x48b   : > { %1994 = vmatprep.mubr.msk.bf16.mxu1 %vm2092_vm1, %v2091_v14 }
 0x55d   : > { %v1988_v27 = vpop.f32.mrb[8].mxu1 }
 0x55e   : > { %v1573_v28 = vadd.f32 %v1988_v27, %v1507_v26  ;;  %v1564_v29 = vpop.f32.mrb[9].mxu1 }
 0x55f   : > { %v1565_v31 = vadd.f32 %v1564_v29, %v1497_v24  ;;  %v1989_v32 = vpop.f32.mrb[10].mxu1 }
 0x560   : > { %v1576_v34 = vadd.f32 %v1989_v32, %v1512_v30  ;;  %v1567_v40 = vpop.f32.mrb[11].mxu1  ;;  %v1581_v37 = vmax.f32 %v1573_v28, 0.0 }
 0x561   : > { %v1568_v35 = vadd.f32 %v1567_v40, %v1502_v25  ;;  %v1579_v3 = vmax.f32 %v1565_v31, 0.0 }
 0x562   : > { %v1582_v45 = vmax.f32 %v1576_v34, 0.0 }
 0x563   : > { %v1580_v2 = vmax.f32 %v1568_v35, 0.0 }
 0x564   : > { %v1584_v8 = vpack.c.bf16 %v1582_v45, %v1581_v37 }
 0x565   : > { %v1583_v38 = vpack.c.bf16 %v1580_v2, %v1579_v3 }
 0x567   : > { %1991 = vmatpush3.bf16.msra.mxu1 %v1583_v38 }
 0x568   : > { %1992 = vmatprep.subr.bf16.mxu1 %v2091_v14 }
 0x56b   : > { %1993 = vmatpush3.bf16.msra.mxu1 %v1584_v8 }
 0x56c   : > { %1998 = vmatprep.subr.bf16.mxu1 %v2091_v14 }
 0x56e   : > { %1995 = vmatmul.mubr.msk.bf16.vlgmr.msra.gmra.mrb[12].mxu1 %vm1061_vm2, %v2077_v43 }
 0x56f   : > { %2000 = vmatprep.mubr.msk.bf16.mxu1 %vm2092_vm1, %v2091_v14  ;;  %v1650_v14 = vpop.permute.xlu1 %1649 }
 0x570   : > { %v1655_v59 = vrot.slane %v1650_v14, %v2317_v41 }
 0x641   : > { %v1637_v48 = vpop.f32.mrb[12].mxu1 }
 0x642   : > { %v1638_v49 = vadd.f32 %v1637_v48, %v1588_v47  ;;  %v1996_v50 = vpop.f32.mrb[13].mxu1 }
 0x643   : > { %v1640_v53 = vpop.f32.mrb[14].mxu1 }
 0x644   : > { %v1641_v54 = vadd.f32 %v1640_v53, %v1593_v52  ;;  %v1997_v55 = vpop.f32.mrb[15].mxu1  ;;  %v1644_v36 = vmax.f32 %v1638_v49, 0.0 }
 0x646   : > { %v1645_v56 = vmax.f32 %v1641_v54, 0.0 }
 0x648   : > { %v1646_v57 = vpack.c.bf16 %v1645_v56, %v1644_v36 }
 0x64a   : > { %1999 = vmatpush3.bf16.msra.mxu1 %v1646_v57 }
 0x64d   : > { %2001 = vmatmul.mubr.msk.bf16.vlgmr.msra.gmra.mrb[16].mxu1 %vm1114_vm3, %v1276_v58 }
 0x720   : > { %v1693_v60 = vpop.f32.mrb[16].mxu1 }
 0x721   : > { %v1694_v63 = vadd.f32 %v1693_v60, %v1655_v59  ;;  %v2002_v42 = vpop.f32.mrb[17].mxu1 }
 0x722   : > { %v1696_v0 = vpop.f32.mrb[18].mxu1 }
 0x723   : > { %1699 = vst [vmem:[%s705_s4] sm:$0x1] %v1694_v63  ;;  %v2003_v1 = vpop.f32.mrb[19].mxu1 }
 0x724 PF: > { %s33_s23 = sadd.s32 1, %s2086_s23  }
 0x725   : > { %p30_p4 = scmp.ge.s32.totalorder %s33_s23, 4  }
 0x727   :  { %32 = sbr.rel (!%p30_p4) target bundleno = 6 (0x6), region = 155 }

</bundles_post_ra>
